<compile_context>
chip_gen: v7x
topology: tpu7x:2x2x1
jax: 0.10.0
libtpu: 0.0.40
codegen_flags: <defaults>
</compile_context>

<pallas_src>
import functools

import jax
import jax.numpy as jnp
from jax.experimental import pallas as pl
from jax.experimental.pallas import tpu as pltpu


def _round_up(n, m):
    return ((n + m - 1) // m) * m


# ------------------------------- fused kernel -------------------------------

def _lenet1_kernel(x_ref, m1_ref, b1_ref, p1r_ref, m2_ref, b2_ref, p2r_ref,
                   wf_ref, bfc_ref, out_ref):
    f32 = jnp.float32
    bf16 = jnp.bfloat16
    tb = x_ref.shape[0]                     # images per grid step (static)

    x = x_ref[...]                          # (TB, 28, 28) f32

    # ---- conv1: ONE matmul.  slab1[b,oh, kh*28+w] = x[b, oh+kh, w] ----
    slab1 = jnp.concatenate([x[:, kh:kh + 24, :] for kh in range(5)], axis=2)
    slab1 = slab1.reshape(tb * 24, 5 * 28).astype(bf16)          # (TB*24, 140)
    c1 = jnp.dot(slab1, m1_ref[...], preferred_element_type=f32)  # (TB*24, 96)
    c1 = jnp.tanh(c1 + b1_ref[...])

    # ---- avgpool1 (2x2): width pool via 0.5-matrix matmul, height pool via
    #      adjacent-row sums + even-row selection ----
    c1w = jnp.dot(c1.astype(bf16), p1r_ref[...],
                  preferred_element_type=f32)                     # (TB*24, 48)
    c1w = c1w.reshape(tb, 24, 48)
    s1 = c1w[:, 0:23, :] + c1w[:, 1:24, :]
    p1 = 0.5 * jnp.concatenate(
        [s1[:, 2 * r:2 * r + 1, :] for r in range(12)], axis=1)   # (TB, 12, 48)

    # ---- conv2: ONE matmul.  slab2[b,oh, kh*48+ci*12+w] = p1[b, oh+kh, ci*12+w]
    slab2 = jnp.concatenate([p1[:, kh:kh + 8, :] for kh in range(5)], axis=2)
    slab2 = slab2.reshape(tb * 8, 5 * 48).astype(bf16)            # (TB*8, 240)
    c2 = jnp.dot(slab2, m2_ref[...], preferred_element_type=f32)  # (TB*8, 96)
    c2 = jnp.tanh(c2 + b2_ref[...])

    # ---- avgpool2 (2x2) + flatten straight into fc feature order ----
    c2w = jnp.dot(c2.astype(bf16), p2r_ref[...],
                  preferred_element_type=f32)                     # (TB*8, 48)
    c2w = c2w.reshape(tb, 8, 48)
    feat = jnp.concatenate(
        [0.5 * (c2w[:, 2 * h, :] + c2w[:, 2 * h + 1, :]) for h in range(4)],
        axis=1).astype(bf16)                                      # (TB, 192)

    # ---- fc: single matmul, lane-dense (TB, 128) store (classes 0..9) ----
    out = jnp.dot(feat, wf_ref[...], preferred_element_type=f32) + bfc_ref[...]
    out_ref[...] = out


# --------------------------- one-time weight packing -------------------------

def pack_params(params):
    """Repack PyTorch-layout weights into MXU-friendly bf16 constant slabs."""
    f32 = jnp.float32
    bf16 = jnp.bfloat16
    w1 = jnp.asarray(params["w1"], f32)
    b1 = jnp.asarray(params["b1"], f32)
    w2 = jnp.asarray(params["w2"], f32)
    b2 = jnp.asarray(params["b2"], f32)
    wfc = jnp.asarray(params["wfc"], f32)
    bfc = jnp.asarray(params["bfc"], f32)

    def band(taps, n_in, n_out):
        # banded matrix B[w, ow] = taps[w - ow] for 0 <= w - ow < 5
        return sum(taps[k] * jnp.eye(n_in, n_out, k=-k, dtype=f32)
                   for k in range(5))

    # conv1: m1[kh*28 + w, co*24 + ow] = w1[co, 0, kh, w - ow]       -> (140, 96)
    m1 = jnp.concatenate([
        jnp.concatenate([band(w1[co, 0, kh], 28, 24) for co in range(4)],
                        axis=1)
        for kh in range(5)], axis=0)

    # conv2: m2[kh*48 + ci*12 + w, co*8 + ow] = w2[co, ci, kh, w - ow] -> (240, 96)
    m2 = jnp.concatenate([
        jnp.concatenate([
            jnp.concatenate([band(w2[co, ci, kh], 12, 8) for ci in range(4)],
                            axis=0)
            for co in range(12)], axis=1)
        for kh in range(5)], axis=0)

    # width-pooling matrices (exact 0.5 entries; exact in bf16)
    a12 = 0.5 * jnp.repeat(jnp.eye(12, dtype=f32), 2, axis=1)      # (12, 24)
    a4 = 0.5 * jnp.repeat(jnp.eye(4, dtype=f32), 2, axis=1)        # (4, 8)
    p1r = jnp.kron(jnp.eye(4, dtype=f32), a12.T)                   # (96, 48)
    p2r = jnp.kron(jnp.eye(12, dtype=f32), a4.T)                   # (96, 48)

    # fc: fold torch's NCHW flatten + weight transpose; pad 10 -> 128 lanes.
    wf = jnp.transpose(wfc.reshape(10, 12, 4, 4), (2, 1, 3, 0)).reshape(192, 10)
    wf = jnp.pad(wf, ((0, 0), (0, 118)))                           # (192, 128)

    return dict(
        m1=m1.astype(bf16), b1=jnp.repeat(b1, 24).reshape(1, 96),
        p1r=p1r.astype(bf16),
        m2=m2.astype(bf16), b2=jnp.repeat(b2, 8).reshape(1, 96),
        p2r=p2r.astype(bf16),
        wf=wf.astype(bf16), bfc=jnp.pad(bfc, (0, 118)).reshape(1, 128),
    )


# ---------------------------------- forward ----------------------------------

@functools.partial(jax.jit, static_argnames=("tb",))
def lenet1_forward(packed, x_nchw, tb=32):
    b = x_nchw.shape[0]
    tb = min(tb, _round_up(b, 8))           # TB images / grid step (mult of 8)
    bp = _round_up(b, tb)
    x3 = x_nchw.reshape(b, 28, 28)
    if bp != b:
        x3 = jnp.pad(x3, ((0, bp - b), (0, 0), (0, 0)))

    flops_img = 2 * (24 * 140 * 96 + 24 * 96 * 48 + 8 * 240 * 96
                     + 8 * 96 * 48 + 192 * 128)
    cost = pl.CostEstimate(
        flops=bp * flops_img,
        transcendentals=bp * 3072,
        bytes_accessed=bp * (28 * 28 * 4 + 128 * 4) + 141_824)

    const2 = lambda i: (0, 0)
    out = pl.pallas_call(
        _lenet1_kernel,
        out_shape=jax.ShapeDtypeStruct((bp, 128), jnp.float32),
        grid=(bp // tb,),
        in_specs=[
            pl.BlockSpec((tb, 28, 28), lambda i: (i, 0, 0)),  # x (TB images)
            pl.BlockSpec((140, 96), const2),                  # conv1 weights
            pl.BlockSpec((1, 96), const2),                    # conv1 bias (wide)
            pl.BlockSpec((96, 48), const2),                   # pool1 width matrix
            pl.BlockSpec((240, 96), const2),                  # conv2 weights
            pl.BlockSpec((1, 96), const2),                    # conv2 bias (wide)
            pl.BlockSpec((96, 48), const2),                   # pool2 width matrix
            pl.BlockSpec((192, 128), const2),                 # fc weights (padded)
            pl.BlockSpec((1, 128), const2),                   # fc bias (padded)
        ],
        out_specs=pl.BlockSpec((tb, 128), lambda i: (i, 0)),
        compiler_params=pltpu.CompilerParams(
            dimension_semantics=("parallel",)),
        cost_estimate=cost,
    )(x3, packed["m1"], packed["b1"], packed["p1r"],
      packed["m2"], packed["b2"], packed["p2r"],
      packed["wf"], packed["bfc"])
    return out[:b, :10]


# -------------------------------- init / reference ---------------------------

def init_params(key):
    ks = jax.random.split(key, 6)

    def u(k, shape, scale):
        return scale * jax.random.uniform(k, shape, jnp.float32, -1.0, 1.0)

    return {
        "w1": u(ks[0], (4, 1, 5, 5), 0.2),        # Conv2d(1, 4, 5)
        "b1": u(ks[1], (4,), 0.2),
        "w2": u(ks[2], (12, 4, 5, 5), 0.1),       # Conv2d(4, 12, 5)
        "b2": u(ks[3], (12,), 0.1),
        "wfc": u(ks[4], (10, 12 * 4 * 4), 0.05),  # Linear(192, 10)
        "bfc": u(ks[5], (10,), 0.05),
    }


def lenet1_reference(params, x):
    dn = ("NCHW", "OIHW", "NCHW")
    hp = jax.lax.Precision.HIGHEST
    y = jax.lax.conv_general_dilated(x, params["w1"], (1, 1), "VALID",
                                     dimension_numbers=dn, precision=hp)
    y = jnp.tanh(y + params["b1"].reshape(1, -1, 1, 1))
    y = jax.lax.reduce_window(y, 0.0, jax.lax.add,
                              (1, 1, 2, 2), (1, 1, 2, 2), "VALID") / 4.0
    y = jax.lax.conv_general_dilated(y, params["w2"], (1, 1), "VALID",
                                     dimension_numbers=dn, precision=hp)
    y = jnp.tanh(y + params["b2"].reshape(1, -1, 1, 1))
    y = jax.lax.reduce_window(y, 0.0, jax.lax.add,
                              (1, 1, 2, 2), (1, 1, 2, 2), "VALID") / 4.0
    y = y.reshape(y.shape[0], -1)
    return y @ params["wfc"].T + params["bfc"]


if __name__ == "__main__":
    key = jax.random.PRNGKey(0)
    pkey, xkey, xkey2 = jax.random.split(key, 3)
    params = init_params(pkey)
    packed = pack_params(params)

    # Small check (batch=2).  28x28 input is required (fc expects 12*4*4 feats).
    x = jax.random.normal(xkey, (2, 1, 28, 28), jnp.float32)
    out = jax.block_until_ready(lenet1_forward(packed, x))
    assert out.shape == (2, 10), out.shape
    ref = lenet1_reference(params, x)
    err = float(jnp.max(jnp.abs(out - ref)))
    assert jnp.allclose(out, ref, atol=2e-2, rtol=2e-2), f"max abs err = {err}"

    # Multi-step grid path (2 steps of TB=32 -> exercises batching + megacore).
    xb = jax.random.normal(xkey2, (64, 1, 28, 28), jnp.float32)
    outb = jax.block_until_ready(lenet1_forward(packed, xb))
    assert outb.shape == (64, 10), outb.shape
    refb = lenet1_reference(params, xb)
    errb = float(jnp.max(jnp.abs(outb - refb)))
    assert jnp.allclose(outb, refb, atol=2e-2, rtol=2e-2), f"max abs err = {errb}"

    print("KERNEL_OK")
</pallas_src>

<mosaic_0001>
module attributes {stable_mosaic.version = 11 : i64} {
  func.func @_lenet1_kernel(%arg0: i32, %arg1: memref<8x28x28xf32, #tpu.memory_space<vmem>>, %arg2: memref<140x96xbf16, #tpu.memory_space<vmem>>, %arg3: memref<1x96xf32, #tpu.memory_space<vmem>>, %arg4: memref<96x48xbf16, #tpu.memory_space<vmem>>, %arg5: memref<240x96xbf16, #tpu.memory_space<vmem>>, %arg6: memref<1x96xf32, #tpu.memory_space<vmem>>, %arg7: memref<96x48xbf16, #tpu.memory_space<vmem>>, %arg8: memref<192x128xbf16, #tpu.memory_space<vmem>>, %arg9: memref<1x128xf32, #tpu.memory_space<vmem>>, %arg10: memref<8x128xf32, #tpu.memory_space<vmem>>) attributes {dimension_semantics = [#tpu.dimension_semantics<parallel>], iteration_bounds = array<i64: 1>, scalar_prefetch = 0 : i64, scratch_operands = 0 : i64, tpu.core_type = #tpu.core_type<tc>, window_params = [{transform_indices = @transform_0, window_bounds = array<i64: 8, 28, 28>}, {pipeline_mode = #tpu.pipeline_mode<synchronous>, transform_indices = @transform_1, window_bounds = array<i64: 140, 96>}, {pipeline_mode = #tpu.pipeline_mode<synchronous>, transform_indices = @transform_2, window_bounds = array<i64: 1, 96>}, {pipeline_mode = #tpu.pipeline_mode<synchronous>, transform_indices = @transform_3, window_bounds = array<i64: 96, 48>}, {pipeline_mode = #tpu.pipeline_mode<synchronous>, transform_indices = @transform_4, window_bounds = array<i64: 240, 96>}, {pipeline_mode = #tpu.pipeline_mode<synchronous>, transform_indices = @transform_5, window_bounds = array<i64: 1, 96>}, {pipeline_mode = #tpu.pipeline_mode<synchronous>, transform_indices = @transform_6, window_bounds = array<i64: 96, 48>}, {pipeline_mode = #tpu.pipeline_mode<synchronous>, transform_indices = @transform_7, window_bounds = array<i64: 192, 128>}, {pipeline_mode = #tpu.pipeline_mode<synchronous>, transform_indices = @transform_8, window_bounds = array<i64: 1, 128>}, {transform_indices = @transform_9, window_bounds = array<i64: 8, 128>}]} {
    %c0 = arith.constant 0 : index
    %c0_0 = arith.constant 0 : index
    %c0_1 = arith.constant 0 : index
    %0 = vector.load %arg1[%c0, %c0_0, %c0_1] : memref<8x28x28xf32, #tpu.memory_space<vmem>>, vector<8x28x28xf32>
    %1 = vector.extract_strided_slice %0 {offsets = [0, 0, 0], sizes = [8, 24, 28], strides = [1, 1, 1]} : vector<8x28x28xf32> to vector<8x24x28xf32>
    %2 = vector.extract_strided_slice %0 {offsets = [0, 1, 0], sizes = [8, 24, 28], strides = [1, 1, 1]} : vector<8x28x28xf32> to vector<8x24x28xf32>
    %3 = vector.extract_strided_slice %0 {offsets = [0, 2, 0], sizes = [8, 24, 28], strides = [1, 1, 1]} : vector<8x28x28xf32> to vector<8x24x28xf32>
    %4 = vector.extract_strided_slice %0 {offsets = [0, 3, 0], sizes = [8, 24, 28], strides = [1, 1, 1]} : vector<8x28x28xf32> to vector<8x24x28xf32>
    %5 = vector.extract_strided_slice %0 {offsets = [0, 4, 0], sizes = [8, 24, 28], strides = [1, 1, 1]} : vector<8x28x28xf32> to vector<8x24x28xf32>
    %6 = tpu.concatenate %1, %2, %3, %4, %5 in 2 : vector<8x24x28xf32>, vector<8x24x28xf32>, vector<8x24x28xf32>, vector<8x24x28xf32>, vector<8x24x28xf32> -> vector<8x24x140xf32>
    %7 = vector.shape_cast %6 : vector<8x24x140xf32> to vector<192x140xf32>
    %8 = arith.truncf %7 : vector<192x140xf32> to vector<192x140xbf16>
    %c0_2 = arith.constant 0 : index
    %c0_3 = arith.constant 0 : index
    %9 = vector.load %arg2[%c0_2, %c0_3] : memref<140x96xbf16, #tpu.memory_space<vmem>>, vector<140x96xbf16>
    %cst = arith.constant dense<0.000000e+00> : vector<192x96xf32>
    %10 = tpu.matmul %8, %9, %cst {dimension_numbers = #tpu.dot_dimension_numbers<[1], [0], [0], [1], [0, 0, 1, 1], [], []>} : vector<192x140xbf16>, vector<140x96xbf16>, vector<192x96xf32> -> vector<192x96xf32>
    %c0_4 = arith.constant 0 : index
    %c0_5 = arith.constant 0 : index
    %11 = vector.load %arg3[%c0_4, %c0_5] : memref<1x96xf32, #tpu.memory_space<vmem>>, vector<1x96xf32>
    %12 = vector.broadcast %11 : vector<1x96xf32> to vector<192x96xf32>
    %13 = arith.addf %10, %12 : vector<192x96xf32>
    %14 = math.tanh %13 : vector<192x96xf32>
    %15 = arith.truncf %14 : vector<192x96xf32> to vector<192x96xbf16>
    %c0_6 = arith.constant 0 : index
    %c0_7 = arith.constant 0 : index
    %16 = vector.load %arg4[%c0_6, %c0_7] : memref<96x48xbf16, #tpu.memory_space<vmem>>, vector<96x48xbf16>
    %cst_8 = arith.constant dense<0.000000e+00> : vector<192x48xf32>
    %17 = tpu.matmul %15, %16, %cst_8 {dimension_numbers = #tpu.dot_dimension_numbers<[1], [0], [0], [1], [0, 0, 1, 1], [], []>} : vector<192x96xbf16>, vector<96x48xbf16>, vector<192x48xf32> -> vector<192x48xf32>
    %18 = vector.shape_cast %17 : vector<192x48xf32> to vector<8x24x48xf32>
    %19 = vector.extract_strided_slice %18 {offsets = [0, 0, 0], sizes = [8, 23, 48], strides = [1, 1, 1]} : vector<8x24x48xf32> to vector<8x23x48xf32>
    %20 = vector.extract_strided_slice %18 {offsets = [0, 1, 0], sizes = [8, 23, 48], strides = [1, 1, 1]} : vector<8x24x48xf32> to vector<8x23x48xf32>
    %21 = arith.addf %19, %20 : vector<8x23x48xf32>
    %22 = vector.extract_strided_slice %21 {offsets = [0, 0, 0], sizes = [8, 1, 48], strides = [1, 1, 1]} : vector<8x23x48xf32> to vector<8x1x48xf32>
    %23 = vector.extract_strided_slice %21 {offsets = [0, 2, 0], sizes = [8, 1, 48], strides = [1, 1, 1]} : vector<8x23x48xf32> to vector<8x1x48xf32>
    %24 = vector.extract_strided_slice %21 {offsets = [0, 4, 0], sizes = [8, 1, 48], strides = [1, 1, 1]} : vector<8x23x48xf32> to vector<8x1x48xf32>
    %25 = vector.extract_strided_slice %21 {offsets = [0, 6, 0], sizes = [8, 1, 48], strides = [1, 1, 1]} : vector<8x23x48xf32> to vector<8x1x48xf32>
    %26 = vector.extract_strided_slice %21 {offsets = [0, 8, 0], sizes = [8, 1, 48], strides = [1, 1, 1]} : vector<8x23x48xf32> to vector<8x1x48xf32>
    %27 = vector.extract_strided_slice %21 {offsets = [0, 10, 0], sizes = [8, 1, 48], strides = [1, 1, 1]} : vector<8x23x48xf32> to vector<8x1x48xf32>
    %28 = vector.extract_strided_slice %21 {offsets = [0, 12, 0], sizes = [8, 1, 48], strides = [1, 1, 1]} : vector<8x23x48xf32> to vector<8x1x48xf32>
    %29 = vector.extract_strided_slice %21 {offsets = [0, 14, 0], sizes = [8, 1, 48], strides = [1, 1, 1]} : vector<8x23x48xf32> to vector<8x1x48xf32>
    %30 = vector.extract_strided_slice %21 {offsets = [0, 16, 0], sizes = [8, 1, 48], strides = [1, 1, 1]} : vector<8x23x48xf32> to vector<8x1x48xf32>
    %31 = vector.extract_strided_slice %21 {offsets = [0, 18, 0], sizes = [8, 1, 48], strides = [1, 1, 1]} : vector<8x23x48xf32> to vector<8x1x48xf32>
    %32 = vector.extract_strided_slice %21 {offsets = [0, 20, 0], sizes = [8, 1, 48], strides = [1, 1, 1]} : vector<8x23x48xf32> to vector<8x1x48xf32>
    %33 = vector.extract_strided_slice %21 {offsets = [0, 22, 0], sizes = [8, 1, 48], strides = [1, 1, 1]} : vector<8x23x48xf32> to vector<8x1x48xf32>
    %34 = tpu.concatenate %22, %23, %24, %25, %26, %27, %28, %29, %30, %31, %32, %33 in 1 : vector<8x1x48xf32>, vector<8x1x48xf32>, vector<8x1x48xf32>, vector<8x1x48xf32>, vector<8x1x48xf32>, vector<8x1x48xf32>, vector<8x1x48xf32>, vector<8x1x48xf32>, vector<8x1x48xf32>, vector<8x1x48xf32>, vector<8x1x48xf32>, vector<8x1x48xf32> -> vector<8x12x48xf32>
    %cst_9 = arith.constant 5.000000e-01 : f32
    %35 = vector.broadcast %cst_9 : f32 to vector<8x12x48xf32>
    %36 = arith.mulf %35, %34 : vector<8x12x48xf32>
    %37 = vector.extract_strided_slice %36 {offsets = [0, 0, 0], sizes = [8, 8, 48], strides = [1, 1, 1]} : vector<8x12x48xf32> to vector<8x8x48xf32>
    %38 = vector.extract_strided_slice %36 {offsets = [0, 1, 0], sizes = [8, 8, 48], strides = [1, 1, 1]} : vector<8x12x48xf32> to vector<8x8x48xf32>
    %39 = vector.extract_strided_slice %36 {offsets = [0, 2, 0], sizes = [8, 8, 48], strides = [1, 1, 1]} : vector<8x12x48xf32> to vector<8x8x48xf32>
    %40 = vector.extract_strided_slice %36 {offsets = [0, 3, 0], sizes = [8, 8, 48], strides = [1, 1, 1]} : vector<8x12x48xf32> to vector<8x8x48xf32>
    %41 = vector.extract_strided_slice %36 {offsets = [0, 4, 0], sizes = [8, 8, 48], strides = [1, 1, 1]} : vector<8x12x48xf32> to vector<8x8x48xf32>
    %42 = tpu.concatenate %37, %38, %39, %40, %41 in 2 : vector<8x8x48xf32>, vector<8x8x48xf32>, vector<8x8x48xf32>, vector<8x8x48xf32>, vector<8x8x48xf32> -> vector<8x8x240xf32>
    %43 = vector.shape_cast %42 : vector<8x8x240xf32> to vector<64x240xf32>
    %44 = arith.truncf %43 : vector<64x240xf32> to vector<64x240xbf16>
    %c0_10 = arith.constant 0 : index
    %c0_11 = arith.constant 0 : index
    %45 = vector.load %arg5[%c0_10, %c0_11] : memref<240x96xbf16, #tpu.memory_space<vmem>>, vector<240x96xbf16>
    %cst_12 = arith.constant dense<0.000000e+00> : vector<64x96xf32>
    %46 = tpu.matmul %44, %45, %cst_12 {dimension_numbers = #tpu.dot_dimension_numbers<[1], [0], [0], [1], [0, 0, 1, 1], [], []>} : vector<64x240xbf16>, vector<240x96xbf16>, vector<64x96xf32> -> vector<64x96xf32>
    %c0_13 = arith.constant 0 : index
    %c0_14 = arith.constant 0 : index
    %47 = vector.load %arg6[%c0_13, %c0_14] : memref<1x96xf32, #tpu.memory_space<vmem>>, vector<1x96xf32>
    %48 = vector.broadcast %47 : vector<1x96xf32> to vector<64x96xf32>
    %49 = arith.addf %46, %48 : vector<64x96xf32>
    %50 = math.tanh %49 : vector<64x96xf32>
    %51 = arith.truncf %50 : vector<64x96xf32> to vector<64x96xbf16>
    %c0_15 = arith.constant 0 : index
    %c0_16 = arith.constant 0 : index
    %52 = vector.load %arg7[%c0_15, %c0_16] : memref<96x48xbf16, #tpu.memory_space<vmem>>, vector<96x48xbf16>
    %cst_17 = arith.constant dense<0.000000e+00> : vector<64x48xf32>
    %53 = tpu.matmul %51, %52, %cst_17 {dimension_numbers = #tpu.dot_dimension_numbers<[1], [0], [0], [1], [0, 0, 1, 1], [], []>} : vector<64x96xbf16>, vector<96x48xbf16>, vector<64x48xf32> -> vector<64x48xf32>
    %54 = vector.shape_cast %53 : vector<64x48xf32> to vector<8x8x48xf32>
    %55 = vector.extract_strided_slice %54 {offsets = [0, 0, 0], sizes = [8, 1, 48], strides = [1, 1, 1]} : vector<8x8x48xf32> to vector<8x1x48xf32>
    %56 = vector.shape_cast %55 : vector<8x1x48xf32> to vector<8x48xf32>
    %57 = vector.extract_strided_slice %54 {offsets = [0, 1, 0], sizes = [8, 1, 48], strides = [1, 1, 1]} : vector<8x8x48xf32> to vector<8x1x48xf32>
    %58 = vector.shape_cast %57 : vector<8x1x48xf32> to vector<8x48xf32>
    %59 = arith.addf %56, %58 : vector<8x48xf32>
    %cst_18 = arith.constant 5.000000e-01 : f32
    %60 = vector.broadcast %cst_18 : f32 to vector<8x48xf32>
    %61 = arith.mulf %60, %59 : vector<8x48xf32>
    %62 = vector.extract_strided_slice %54 {offsets = [0, 2, 0], sizes = [8, 1, 48], strides = [1, 1, 1]} : vector<8x8x48xf32> to vector<8x1x48xf32>
    %63 = vector.shape_cast %62 : vector<8x1x48xf32> to vector<8x48xf32>
    %64 = vector.extract_strided_slice %54 {offsets = [0, 3, 0], sizes = [8, 1, 48], strides = [1, 1, 1]} : vector<8x8x48xf32> to vector<8x1x48xf32>
    %65 = vector.shape_cast %64 : vector<8x1x48xf32> to vector<8x48xf32>
    %66 = arith.addf %63, %65 : vector<8x48xf32>
    %cst_19 = arith.constant 5.000000e-01 : f32
    %67 = vector.broadcast %cst_19 : f32 to vector<8x48xf32>
    %68 = arith.mulf %67, %66 : vector<8x48xf32>
    %69 = vector.extract_strided_slice %54 {offsets = [0, 4, 0], sizes = [8, 1, 48], strides = [1, 1, 1]} : vector<8x8x48xf32> to vector<8x1x48xf32>
    %70 = vector.shape_cast %69 : vector<8x1x48xf32> to vector<8x48xf32>
    %71 = vector.extract_strided_slice %54 {offsets = [0, 5, 0], sizes = [8, 1, 48], strides = [1, 1, 1]} : vector<8x8x48xf32> to vector<8x1x48xf32>
    %72 = vector.shape_cast %71 : vector<8x1x48xf32> to vector<8x48xf32>
    %73 = arith.addf %70, %72 : vector<8x48xf32>
    %cst_20 = arith.constant 5.000000e-01 : f32
    %74 = vector.broadcast %cst_20 : f32 to vector<8x48xf32>
    %75 = arith.mulf %74, %73 : vector<8x48xf32>
    %76 = vector.extract_strided_slice %54 {offsets = [0, 6, 0], sizes = [8, 1, 48], strides = [1, 1, 1]} : vector<8x8x48xf32> to vector<8x1x48xf32>
    %77 = vector.shape_cast %76 : vector<8x1x48xf32> to vector<8x48xf32>
    %78 = vector.extract_strided_slice %54 {offsets = [0, 7, 0], sizes = [8, 1, 48], strides = [1, 1, 1]} : vector<8x8x48xf32> to vector<8x1x48xf32>
    %79 = vector.shape_cast %78 : vector<8x1x48xf32> to vector<8x48xf32>
    %80 = arith.addf %77, %79 : vector<8x48xf32>
    %cst_21 = arith.constant 5.000000e-01 : f32
    %81 = vector.broadcast %cst_21 : f32 to vector<8x48xf32>
    %82 = arith.mulf %81, %80 : vector<8x48xf32>
    %83 = tpu.concatenate %61, %68, %75, %82 in 1 : vector<8x48xf32>, vector<8x48xf32>, vector<8x48xf32>, vector<8x48xf32> -> vector<8x192xf32>
    %84 = arith.truncf %83 : vector<8x192xf32> to vector<8x192xbf16>
    %c0_22 = arith.constant 0 : index
    %c0_23 = arith.constant 0 : index
    %85 = vector.load %arg8[%c0_22, %c0_23] : memref<192x128xbf16, #tpu.memory_space<vmem>>, vector<192x128xbf16>
    %cst_24 = arith.constant dense<0.000000e+00> : vector<8x128xf32>
    %86 = tpu.matmul %84, %85, %cst_24 {dimension_numbers = #tpu.dot_dimension_numbers<[1], [0], [0], [1], [0, 0, 1, 1], [], []>} : vector<8x192xbf16>, vector<192x128xbf16>, vector<8x128xf32> -> vector<8x128xf32>
    %c0_25 = arith.constant 0 : index
    %c0_26 = arith.constant 0 : index
    %87 = vector.load %arg9[%c0_25, %c0_26] : memref<1x128xf32, #tpu.memory_space<vmem>>, vector<1x128xf32>
    %88 = vector.broadcast %87 : vector<1x128xf32> to vector<8x128xf32>
    %89 = arith.addf %86, %88 : vector<8x128xf32>
    %c0_27 = arith.constant 0 : index
    %c0_28 = arith.constant 0 : index
    %90 = vector.load %arg10[%c0_27, %c0_28] : memref<8x128xf32, #tpu.memory_space<vmem>>, vector<8x128xf32>
    tpu.vector_store %arg10[%c0_27, %c0_28], %89 {strides = array<i32>} : memref<8x128xf32, #tpu.memory_space<vmem>>, vector<8x128xf32>,
    return
  }
  func.func @transform_0(%arg0: i32) -> (i32, i32, i32) {
    %c0_i32 = arith.constant 0 : i32
    %c0_i32_0 = arith.constant 0 : i32
    %c0_i32_1 = arith.constant 0 : i32
    return %arg0, %c0_i32, %c0_i32_0 : i32, i32, i32
  }
  func.func @transform_1(%arg0: i32) -> (i32, i32) {
    %c0_i32 = arith.constant 0 : i32
    %c0_i32_0 = arith.constant 0 : i32
    %c0_i32_1 = arith.constant 0 : i32
    return %c0_i32, %c0_i32_0 : i32, i32
  }
  func.func @transform_2(%arg0: i32) -> (i32, i32) {
    %c0_i32 = arith.constant 0 : i32
    %c0_i32_0 = arith.constant 0 : i32
    %c0_i32_1 = arith.constant 0 : i32
    return %c0_i32, %c0_i32_0 : i32, i32
  }
  func.func @transform_3(%arg0: i32) -> (i32, i32) {
    %c0_i32 = arith.constant 0 : i32
    %c0_i32_0 = arith.constant 0 : i32
    %c0_i32_1 = arith.constant 0 : i32
    return %c0_i32, %c0_i32_0 : i32, i32
  }
  func.func @transform_4(%arg0: i32) -> (i32, i32) {
    %c0_i32 = arith.constant 0 : i32
    %c0_i32_0 = arith.constant 0 : i32
    %c0_i32_1 = arith.constant 0 : i32
    return %c0_i32, %c0_i32_0 : i32, i32
  }
  func.func @transform_5(%arg0: i32) -> (i32, i32) {
    %c0_i32 = arith.constant 0 : i32
    %c0_i32_0 = arith.constant 0 : i32
    %c0_i32_1 = arith.constant 0 : i32
    return %c0_i32, %c0_i32_0 : i32, i32
  }
  func.func @transform_6(%arg0: i32) -> (i32, i32) {
    %c0_i32 = arith.constant 0 : i32
    %c0_i32_0 = arith.constant 0 : i32
    %c0_i32_1 = arith.constant 0 : i32
    return %c0_i32, %c0_i32_0 : i32, i32
  }
  func.func @transform_7(%arg0: i32) -> (i32, i32) {
    %c0_i32 = arith.constant 0 : i32
    %c0_i32_0 = arith.constant 0 : i32
    %c0_i32_1 = arith.constant 0 : i32
    return %c0_i32, %c0_i32_0 : i32, i32
  }
  func.func @transform_8(%arg0: i32) -> (i32, i32) {
    %c0_i32 = arith.constant 0 : i32
    %c0_i32_0 = arith.constant 0 : i32
    %c0_i32_1 = arith.constant 0 : i32
    return %c0_i32, %c0_i32_0 : i32, i32
  }
  func.func @transform_9(%arg0: i32) -> (i32, i32) {
    %c0_i32 = arith.constant 0 : i32
    %c0_i32_0 = arith.constant 0 : i32
    return %arg0, %c0_i32 : i32, i32
  }
}

</mosaic_0001>

<bundles_post_ra>
// kernel: lenet1_forward.1
= control target key start
LH: loop header
LB: loop body
LE: loop exit
PB: predicated region body
PF: predicated region fallthrough
CT: control target
= control target key end

     0   :  { %vm97_vm0 = vcmask 1046528   ;;  %vm355_vm1 = vcmask 1044480   ;;  %vm226_vm2 = vcmask 1045504   ;;  %vm484_vm3 = vcmask 1043456   ;;  %s3108_s21 = smov 28   ;;  %s3109_s22 = smov 84   ;;  %s4270_s0 = inlined_call_operand.vmem [shape: f32[8,28,28], index: 0, kind: input, shape index: {}]   ;;  %s4271_s1 = inlined_call_operand.vmem [shape: bf16[140,96], index: 1, kind: input, shape index: {}]   ;;  %s4272_s3 = inlined_call_operand.vmem [shape: bf16[96,48], index: 3, kind: input, shape index: {}]   ;;  %s4273_s2 = inlined_call_operand.vmem [shape: f32[1,96], index: 2, kind: input, shape index: {}]   ;;  %s4274_s4 = inlined_call_operand.vmem [shape: bf16[240,96], index: 4, kind: input, shape index: {}]   ;;  %s4275_s6 = inlined_call_operand.vmem [shape: bf16[96,48], index: 6, kind: input, shape index: {}]   ;;  %s4276_s5 = inlined_call_operand.vmem [shape: f32[1,96], index: 5, kind: input, shape index: {}]   ;;  %s4277_s7 = inlined_call_operand.vmem [shape: bf16[192,128], index: 7, kind: input, shape index: {}]   ;;  %s4278_s8 = inlined_call_operand.vmem [shape: f32[1,128], index: 8, kind: input, shape index: {}]   ;;  %s4279_s9 = inlined_call_operand.vmem [shape: f32[8,128], index: 9, kind: output, shape index: {}]  }
   0x1   :  { %v3169_v0 = vld [vmem:[%s4270_s0] sm:$0xff]  ;;  %v3174_v1 = vld [vmem:[%s4270_s0 + $0x8] sm:$0xff]  ;;  %v3179_v2 = vld [vmem:[%s4270_s0 + $0x10] sm:$0xff]  ;;  %v3107_v7 = vmov 0   ;;  %s3110_s27 = smov 56   ;;  %s3111_s28 = smov 112  }
   0x2   :  { %v98_v3 = vrot.slane %v3169_v0, 1  ;;  %v99_v4 = vrot.slane %v3174_v1, 1  ;;  %v101_v5 = vrot.slane %v3179_v2, 1  ;;  %v356_v6 = vrot.slane %v3169_v0, 3  ;;  %855 = vmatprep.subr.bf16.mxu0 %v3107_v7  ;;  %v36_v16 = vld [vmem:[%s4270_s0 + $0x18] sm:$0xf] }
   0x3   :  { %v357_v8 = vrot.slane %v3174_v1, 3  ;;  %v359_v9 = vrot.slane %v3179_v2, 3  ;;  %v227_v10 = vrot.slane %v3169_v0, 2  ;;  %v228_v11 = vrot.slane %v3174_v1, 2  ;;  %v3200_v17 = vld [vmem:[%s4270_s0 + $0x20] sm:$0xff]  ;;  %v3205_v18 = vld [vmem:[%s4270_s0 + $0x28] sm:$0xff] }
   0x4   :  { %v100_v12 = vsel %vm97_vm0, %v98_v3, %v99_v4  ;;  %v102_v13 = vsel %vm97_vm0, %v99_v4, %v101_v5  ;;  %v230_v14 = vrot.slane %v3179_v2, 2  ;;  %v485_v15 = vrot.slane %v3169_v0, 4  ;;  %v3226_v39 = vld [vmem:[%s4270_s0 + $0x30] sm:$0xff]  ;;  %v40_v44 = vld [vmem:[%s4270_s0 + $0x38] sm:$0xf]  ;;  %v3247_v57 = vld [vmem:[%s4270_s0 + $0x40] sm:$0xff] }
   0x5   :  { %v2675_v19 = vpack.i.bf16 %v102_v13, %v100_v12  ;;  %v358_v20 = vsel %vm355_vm1, %v356_v6, %v357_v8  ;;  %v360_v21 = vsel %vm355_vm1, %v357_v8, %v359_v9  ;;  %v229_v22 = vsel %vm226_vm2, %v227_v10, %v228_v11  ;;  %v3252_v58 = vld [vmem:[%s4270_s0 + $0x48] sm:$0xff]  ;;  %v2995_v62 = vld [vmem:[%s4271_s1] sm:$0xff]   ;;  %s3112_s14 = smov 16   ;;  %s3114_s17 = smov 64  }
   0x6   :  { %v2685_v23 = vpack.i.bf16 %v360_v21, %v358_v20  ;;  %v231_v24 = vsel %vm226_vm2, %v228_v11, %v230_v14  ;;  %v486_v25 = vrot.slane %v3174_v1, 4  ;;  %v488_v26 = vrot.slane %v3179_v2, 4  ;;  %856 = vmatpush1.bf16.msra.mxu0 %v2995_v62  ;;  %v2996_v11 = vld [vmem:[%s4271_s1 + $0x8] sm:$0xff]   ;;  %s3115_s18 = smov 48  }
   0x7   :  { %2676 = vrot.lane.b32.xlu0 %v2675_v19, %s3108_s21  ;;  %v2680_v27 = vpack.i.bf16 %v231_v24, %v229_v22  ;;  %v103_v28 = vrot.slane %v36_v16, 1  ;;  %v105_v29 = vrot.slane %v3200_v17, 1  ;;  %v106_v30 = vrot.slane %v3205_v18, 1  ;;  %857 = vmatprep.subr.bf16.mxu0 %v3107_v7 }
   0x8   :  { %2686 = vrot.lane.b32.xlu1 %v2685_v23, %s3109_s22  ;;  %v487_v31 = vsel %vm484_vm3, %v485_v15, %v486_v25  ;;  %v489_v32 = vsel %vm484_vm3, %v486_v25, %v488_v26  ;;  %v232_v33 = vrot.slane %v36_v16, 2  ;;  %v234_v34 = vrot.slane %v3200_v17, 2 }
   0x9   :  { %v2690_v35 = vpack.i.bf16 %v489_v32, %v487_v31  ;;  %v104_v36 = vsel %vm97_vm0, %v101_v5, %v103_v28  ;;  %v107_v37 = vsel %vm97_vm0, %v105_v29, %v106_v30  ;;  %v235_v38 = vrot.slane %v3205_v18, 2  ;;  %v3265_v5 = vld [vmem:[%s4270_s0 + $0x50] sm:$0xff] }
   0xa   :  { %v2695_v40 = vpack.i.bf16 %v107_v37, %v104_v36  ;;  %v233_v41 = vsel %vm226_vm2, %v230_v14, %v232_v33  ;;  %v361_v42 = vrot.slane %v36_v16, 3  ;;  %v363_v43 = vrot.slane %v3200_v17, 3  ;;  %858 = vmatpush1.bf16.msra.mxu0 %v2996_v11  ;;  %v2997_v28 = vld [vmem:[%s4271_s1 + $0x10] sm:$0xff]   ;;  %v3296_v33 = vld [vmem:[%s4270_s0 + $0x58] sm:$0xf] }
   0xb   :  { %2681 = vrot.lane.b32.xlu0 %v2680_v27, %s3110_s27  ;;  %v236_v45 = vsel %vm226_vm2, %v234_v34, %v235_v38  ;;  %v364_v46 = vrot.slane %v3205_v18, 3  ;;  %v490_v47 = vrot.slane %v36_v16, 4  ;;  %v492_v48 = vrot.slane %v3200_v17, 4  ;;  %859 = vmatprep.subr.bf16.mxu0 %v3107_v7  ;;  %v3301_v34 = vld [vmem:[%s4270_s0 + $0x60] sm:$0xff] }
   0xc   :  { %2691 = vrot.lane.b32.xlu1 %v2690_v35, %s3111_s28  ;;  %v2700_v49 = vpack.i.bf16 %v236_v45, %v233_v41  ;;  %v362_v50 = vsel %vm355_vm1, %v359_v9, %v361_v42  ;;  %v493_v51 = vrot.slane %v3205_v18, 4  ;;  %v108_v52 = vrot.slane %v3226_v39, 1  ;;  %v2998_v45 = vld [vmem:[%s4271_s1 + $0x18] sm:$0xff]  }
   0xd   :  { %v365_v53 = vsel %vm355_vm1, %v363_v43, %v364_v46  ;;  %v491_v54 = vsel %vm484_vm3, %v488_v26, %v490_v47  ;;  %v110_v55 = vrot.slane %v40_v44, 1  ;;  %v237_v56 = vrot.slane %v3226_v39, 2 }
   0xe   :  { %v494_v59 = vsel %vm484_vm3, %v492_v48, %v493_v51  ;;  %v109_v60 = vsel %vm97_vm0, %v106_v30, %v108_v52  ;;  %v239_v61 = vrot.slane %v40_v44, 2  ;;  %v2705_v63 = vpack.i.bf16 %v365_v53, %v362_v50  ;;  %860 = vmatpush1.bf16.msra.mxu0 %v2997_v28 }
   0xf   :  { %2696 = vrot.lane.b32.xlu0 %v2695_v40, %s3108_s21  ;;  %v111_v3 = vsel %vm97_vm0, %v108_v52, %v110_v55  ;;  %v366_v4 = vrot.slane %v3226_v39, 3  ;;  %v2710_v6 = vpack.i.bf16 %v494_v59, %v491_v54  ;;  %v238_v8 = vsel %vm226_vm2, %v235_v38, %v237_v56  ;;  %861 = vmatprep.subr.bf16.mxu0 %v3107_v7 }
  0x10   :  { %2701 = vrot.lane.b32.xlu1 %v2700_v49, %s3110_s27  ;;  %v368_v9 = vrot.slane %v40_v44, 3  ;;  %v495_v10 = vrot.slane %v3226_v39, 4  ;;  %v2715_v12 = vpack.i.bf16 %v111_v3, %v109_v60  ;;  %v240_v13 = vsel %vm226_vm2, %v237_v56, %v239_v61  ;;  %v2999_v56 = vld [vmem:[%s4271_s1 + $0x20] sm:$0xff]  }
  0x11   :  { %v497_v14 = vrot.slane %v40_v44, 4  ;;  %v112_v15 = vrot.slane %v3247_v57, 1  ;;  %v367_v16 = vsel %vm355_vm1, %v364_v46, %v366_v4  ;;  %v113_v20 = vrot.slane %v3252_v58, 1  ;;  %v3316_v44 = vld [vmem:[%s4270_s0 + $0x68] sm:$0xff] }
  0x12   :  { %v369_v19 = vsel %vm355_vm1, %v366_v4, %v368_v9  ;;  %v115_v21 = vrot.slane %v3265_v5, 1  ;;  %v496_v22 = vsel %vm484_vm3, %v493_v51, %v495_v10  ;;  %v241_v24 = vrot.slane %v3247_v57, 2  ;;  %862 = vmatpush1.bf16.msra.mxu0 %v2998_v45  ;;  %v3344_v4 = vld [vmem:[%s4270_s0 + $0x70] sm:$0xff]  ;;  %v3002_v45 = vld [vmem:[%s4271_s1 + $0x38] sm:$0xff]  }
  0x13   :  { %2706 = vrot.lane.b32.xlu0 %v2705_v63, %s3109_s22  ;;  %v498_v23 = vsel %vm484_vm3, %v495_v10, %v497_v14  ;;  %v242_v25 = vrot.slane %v3252_v58, 2  ;;  %v2720_v26 = vpack.i.bf16 %v240_v13, %v238_v8  ;;  %v244_v27 = vrot.slane %v3265_v5, 2  ;;  %863 = vmatprep.subr.bf16.mxu0 %v3107_v7 }
  0x14   :  { %2711 = vrot.lane.b32.xlu1 %v2710_v6, %s3111_s28  ;;  %v2725_v29 = vpack.i.bf16 %v369_v19, %v367_v16  ;;  %v2730_v30 = vpack.i.bf16 %v498_v23, %v496_v22  ;;  %v114_v31 = vsel %vm97_vm0, %v112_v15, %v113_v20  ;;  %v116_v32 = vsel %vm97_vm0, %v113_v20, %v115_v21  ;;  %v48_v6 = vld [vmem:[%s4270_s0 + $0x78] sm:$0xf] }
  0x15   :  { %v243_v35 = vsel %vm226_vm2, %v241_v24, %v242_v25  ;;  %v245_v36 = vsel %vm226_vm2, %v242_v25, %v244_v27  ;;  %v370_v37 = vrot.slane %v3247_v57, 3  ;;  %v371_v38 = vrot.slane %v3252_v58, 3 }
  0x16   :  { %v373_v40 = vrot.slane %v3265_v5, 3  ;;  %v499_v41 = vrot.slane %v3247_v57, 4  ;;  %v500_v42 = vrot.slane %v3252_v58, 4  ;;  %v502_v43 = vrot.slane %v3265_v5, 4  ;;  %864 = vmatpush1.bf16.msra.mxu0 %v2999_v56 }
  0x17   :  { %2716 = vrot.lane.b32.xlu0 %v2715_v12, %s3108_s21  ;;  %v2735_v46 = vpack.i.bf16 %v116_v32, %v114_v31  ;;  %v2740_v47 = vpack.i.bf16 %v245_v36, %v243_v35  ;;  %v372_v48 = vsel %vm355_vm1, %v370_v37, %v371_v38  ;;  %v117_v49 = vrot.slane %v3296_v33, 1  ;;  %v3000_v12 = vld [vmem:[%s4271_s1 + $0x28] sm:$0xff]   ;;  %865 = vmatprep.subr.bf16.mxu0 %v3107_v7  ;;  %v3381_v36 = vld [vmem:[%s4270_s0 + $0x80] sm:$0xff] }
  0x18   :  { %2721 = vrot.lane.b32.xlu1 %v2720_v26, %s3110_s27  ;;  %v119_v50 = vrot.slane %v3301_v34, 1  ;;  %v120_v51 = vrot.slane %v3316_v44, 1  ;;  %v374_v52 = vsel %vm355_vm1, %v371_v38, %v373_v40  ;;  %v501_v53 = vsel %vm484_vm3, %v499_v41, %v500_v42  ;;  %v3001_v26 = vld [vmem:[%s4271_s1 + $0x30] sm:$0xff]  }
  0x19   :  { %v503_v54 = vsel %vm484_vm3, %v500_v42, %v502_v43  ;;  %v246_v55 = vrot.slane %v3296_v33, 2  ;;  %v248_v59 = vrot.slane %v3301_v34, 2  ;;  %v249_v60 = vrot.slane %v3316_v44, 2  ;;  %v3392_v41 = vld [vmem:[%s4270_s0 + $0x90] sm:$0xff] }
  0x1a   :  { %v2745_v61 = vpack.i.bf16 %v374_v52, %v372_v48  ;;  %v2750_v62 = vpack.i.bf16 %v503_v54, %v501_v53  ;;  %v118_v63 = vsel %vm97_vm0, %v115_v21, %v117_v49  ;;  %v121_v3 = vsel %vm97_vm0, %v119_v50, %v120_v51  ;;  %866 = vmatpush1.bf16.msra.mxu0 %v3000_v12 }
  0x1b   :  { %2726 = vrot.lane.b32.xlu0 %v2725_v29, %s3109_s22  ;;  %v247_v8 = vsel %vm226_vm2, %v244_v27, %v246_v55  ;;  %v375_v9 = vrot.slane %v3296_v33, 3  ;;  %v377_v10 = vrot.slane %v3301_v34, 3  ;;  %v378_v11 = vrot.slane %v3316_v44, 3  ;;  %867 = vmatprep.subr.bf16.mxu0 %v3107_v7 }
  0x1c   :  { %2731 = vrot.lane.b32.xlu1 %v2730_v30, %s3111_s28  ;;  %v250_v13 = vsel %vm226_vm2, %v248_v59, %v249_v60  ;;  %v504_v14 = vrot.slane %v3296_v33, 4  ;;  %v506_v15 = vrot.slane %v3301_v34, 4  ;;  %v507_v16 = vrot.slane %v3316_v44, 4 }
  0x1d   :  { %v122_v19 = vrot.slane %v3344_v4, 1  ;;  %v124_v20 = vrot.slane %v48_v6, 1  ;;  %v2755_v21 = vpack.i.bf16 %v121_v3, %v118_v63  ;;  %v2760_v22 = vpack.i.bf16 %v250_v13, %v247_v8 }
  0x1e   :  { %v376_v23 = vsel %vm355_vm1, %v373_v40, %v375_v9  ;;  %v379_v24 = vsel %vm355_vm1, %v377_v10, %v378_v11  ;;  %v251_v25 = vrot.slane %v3344_v4, 2  ;;  %v505_v27 = vsel %vm484_vm3, %v502_v43, %v504_v14  ;;  %v3387_v40 = vld [vmem:[%s4270_s0 + $0x88] sm:$0xff]  ;;  %868 = vmatpush1.bf16.msra.mxu0 %v3001_v26 }
  0x1f   :  { %2736 = vrot.lane.b32.xlu0 %v2735_v46, %s3108_s21  ;;  %v508_v28 = vsel %vm484_vm3, %v506_v15, %v507_v16  ;;  %v253_v29 = vrot.slane %v48_v6, 2  ;;  %v380_v30 = vrot.slane %v3344_v4, 3  ;;  %v123_v31 = vsel %vm97_vm0, %v120_v51, %v122_v19  ;;  %869 = vmatprep.subr.bf16.mxu0 %v3107_v7 }
  0x20   :  { %2741 = vrot.lane.b32.xlu1 %v2740_v47, %s3110_s27  ;;  %v125_v32 = vsel %vm97_vm0, %v122_v19, %v124_v20  ;;  %v382_v33 = vrot.slane %v48_v6, 3  ;;  %v509_v35 = vrot.slane %v3344_v4, 4  ;;  %v2765_v37 = vpack.i.bf16 %v379_v24, %v376_v23  ;;  %v3437_v19 = vld [vmem:[%s4270_s0 + $0xa8] sm:$0xff] }
  0x21   :  { %v511_v38 = vrot.slane %v48_v6, 4  ;;  %v2770_v42 = vpack.i.bf16 %v508_v28, %v505_v27  ;;  %v252_v43 = vsel %vm226_vm2, %v249_v60, %v251_v25  ;;  %v2775_v46 = vpack.i.bf16 %v125_v32, %v123_v31 }
  0x22   :  { %v254_v47 = vsel %vm226_vm2, %v251_v25, %v253_v29  ;;  %v381_v48 = vsel %vm355_vm1, %v378_v11, %v380_v30  ;;  %v126_v49 = vrot.slane %v3381_v36, 1  ;;  %v383_v50 = vsel %vm355_vm1, %v380_v30, %v382_v33  ;;  %870 = vmatpush1.bf16.msra.mxu0 %v3002_v45  ;;  %v52_v11 = vld [vmem:[%s4270_s0 + $0x98] sm:$0xf] }
  0x23   :  { %2746 = vrot.lane.b32.xlu0 %v2745_v61, %s3109_s22  ;;  %v510_v51 = vsel %vm484_vm3, %v507_v16, %v509_v35  ;;  %v127_v52 = vrot.slane %v3387_v40, 1  ;;  %v129_v53 = vrot.slane %v3392_v41, 1  ;;  %v512_v54 = vsel %vm484_vm3, %v509_v35, %v511_v38  ;;  %871 = vmatprep.subr.bf16.mxu0 %v3107_v7  ;;  %v3432_v16 = vld [vmem:[%s4270_s0 + $0xa0] sm:$0xff]  ;;  %v3455_v38 = vld [vmem:[%s4270_s0 + $0xb0] sm:$0xff] }
  0x24   :  { %2751 = vrot.lane.b32.xlu1 %v2750_v62, %s3111_s28  ;;  %v255_v55 = vrot.slane %v3381_v36, 2  ;;  %v256_v56 = vrot.slane %v3387_v40, 2  ;;  %v258_v59 = vrot.slane %v3392_v41, 2  ;;  %v2780_v60 = vpack.i.bf16 %v254_v47, %v252_v43 }
  0x25   :  { %v2785_v61 = vpack.i.bf16 %v383_v50, %v381_v48  ;;  %v2790_v62 = vpack.i.bf16 %v512_v54, %v510_v51  ;;  %v128_v63 = vsel %vm97_vm0, %v126_v49, %v127_v52  ;;  %v130_v3 = vsel %vm97_vm0, %v127_v52, %v129_v53 }
  0x26   :  { %v257_v6 = vsel %vm226_vm2, %v255_v55, %v256_v56  ;;  %v259_v8 = vsel %vm226_vm2, %v256_v56, %v258_v59  ;;  %v384_v9 = vrot.slane %v3381_v36, 3  ;;  %v385_v10 = vrot.slane %v3387_v40, 3 }
  0x27   :  { %2756 = vrot.lane.b32.xlu0 %v2755_v21, %s3108_s21  ;;  %v387_v12 = vrot.slane %v3392_v41, 3  ;;  %v513_v13 = vrot.slane %v3381_v36, 4  ;;  %v514_v14 = vrot.slane %v3387_v40, 4  ;;  %v516_v15 = vrot.slane %v3392_v41, 4 }
  0x28   :  { %2761 = vrot.lane.b32.xlu1 %v2760_v22, %s3110_s27  ;;  %v2795_v20 = vpack.i.bf16 %v130_v3, %v128_v63  ;;  %v2800_v21 = vpack.i.bf16 %v259_v8, %v257_v6  ;;  %v386_v22 = vsel %vm355_vm1, %v384_v9, %v385_v10  ;;  %v131_v23 = vrot.slane %v52_v11, 1 }
  0x29   :  { %v133_v24 = vrot.slane %v3432_v16, 1  ;;  %v134_v25 = vrot.slane %v3437_v19, 1  ;;  %v388_v26 = vsel %vm355_vm1, %v385_v10, %v387_v12  ;;  %v515_v27 = vsel %vm484_vm3, %v513_v13, %v514_v14 }
  0x2a   :  { %v517_v28 = vsel %vm484_vm3, %v514_v14, %v516_v15  ;;  %v260_v29 = vrot.slane %v52_v11, 2  ;;  %v262_v30 = vrot.slane %v3432_v16, 2  ;;  %v263_v31 = vrot.slane %v3437_v19, 2  ;;  %v3488_v14 = vld [vmem:[%s4270_s0 + $0xc8] sm:$0xff] }
  0x2b   :  { %2766 = vrot.lane.b32.xlu0 %v2765_v37, %s3109_s22  ;;  %v2805_v32 = vpack.i.bf16 %v388_v26, %v386_v22  ;;  %v2810_v33 = vpack.i.bf16 %v517_v28, %v515_v27  ;;  %v132_v35 = vsel %vm97_vm0, %v129_v53, %v131_v23  ;;  %v135_v37 = vsel %vm97_vm0, %v133_v24, %v134_v25  ;;  %v3003_v26 = vld [vmem:[%s4271_s1 + $0x40] sm:$0x3f]  }
  0x2c   :  { %2771 = vrot.lane.b32.xlu1 %v2770_v42, %s3111_s28  ;;  %v56_v42 = vld [vmem:[%s4270_s0 + $0xb8] sm:$0xf]  ;;  %v261_v43 = vsel %vm226_vm2, %v258_v59, %v260_v29  ;;  %v389_v45 = vrot.slane %v52_v11, 3  ;;  %v392_v47 = vrot.slane %v3437_v19, 3  ;;  %v264_v48 = vsel %vm226_vm2, %v262_v30, %v263_v31 }
  0x2d   :  { %v518_v49 = vrot.slane %v52_v11, 4  ;;  %v520_v50 = vrot.slane %v3432_v16, 4  ;;  %v521_v51 = vrot.slane %v3437_v19, 4  ;;  %v136_v52 = vrot.slane %v3455_v38, 1  ;;  %v3482_v11 = vld [vmem:[%s4270_s0 + $0xc0] sm:$0xff] }
  0x2e   :  { %v138_v53 = vrot.slane %v56_v42, 1  ;;  %v2815_v54 = vpack.i.bf16 %v135_v37, %v132_v35  ;;  %v2820_v55 = vpack.i.bf16 %v264_v48, %v261_v43  ;;  %v390_v56 = vsel %vm355_vm1, %v387_v12, %v389_v45 }
  0x2f   :  { %2776 = vrot.lane.b32.xlu0 %v2775_v46, %s3108_s21  ;;  %v391_v46 = vrot.slane %v3432_v16, 3  ;;  %v267_v63 = vrot.slane %v56_v42, 2  ;;  %v394_v3 = vrot.slane %v3455_v38, 3  ;;  %v137_v6 = vsel %vm97_vm0, %v134_v25, %v136_v52 }
  0x30   :  { %2781 = vrot.lane.b32.xlu1 %v2780_v60, %s3110_s27  ;;  %v265_v60 = vrot.slane %v3455_v38, 2  ;;  %v139_v8 = vsel %vm97_vm0, %v136_v52, %v138_v53  ;;  %v396_v9 = vrot.slane %v56_v42, 3  ;;  %v523_v10 = vrot.slane %v3455_v38, 4  ;;  %v60_v52 = vld [vmem:[%s4270_s0 + $0xd8] sm:$0xf] }
  0x31   :  { %v393_v59 = vsel %vm355_vm1, %v391_v46, %v392_v47  ;;  %v525_v13 = vrot.slane %v56_v42, 4  ;;  %v2835_v22 = vpack.i.bf16 %v139_v8, %v137_v6  ;;  %v395_v24 = vsel %vm355_vm1, %v392_v47, %v394_v3 }
  0x32   :  { %v2825_v12 = vpack.i.bf16 %v393_v59, %v390_v56  ;;  %v268_v23 = vsel %vm226_vm2, %v265_v60, %v267_v63  ;;  %v140_v25 = vrot.slane %v3482_v11, 1  ;;  %v397_v27 = vsel %vm355_vm1, %v394_v3, %v396_v9  ;;  %v3533_v59 = vld [vmem:[%s4270_s0 + $0xe0] sm:$0xff] }
  0x33   :  { %2786 = vrot.lane.b32.xlu0 %v2785_v61, %s3109_s22  ;;  %v519_v61 = vsel %vm484_vm3, %v516_v15, %v518_v49  ;;  %v3493_v15 = vld [vmem:[%s4270_s0 + $0xd0] sm:$0xff]  ;;  %v524_v28 = vsel %vm484_vm3, %v521_v51, %v523_v10  ;;  %v141_v29 = vrot.slane %v3488_v14, 1  ;;  %v853_v42 = vsel %vm226_vm2, %v3003_v26, 0 }
  0x34   :  { %2791 = vrot.lane.b32.xlu1 %v2790_v62, %s3111_s28  ;;  %v522_v62 = vsel %vm484_vm3, %v520_v50, %v521_v51  ;;  %v143_v30 = vrot.slane %v3493_v15, 1  ;;  %v272_v35 = vrot.slane %v3493_v15, 2  ;;  %v2845_v43 = vpack.i.bf16 %v397_v27, %v395_v24  ;;  %872 = vmatpush1.bf16.msra.mxu0 %v853_v42 }
  0x35   :  { %v142_v46 = vsel %vm97_vm0, %v140_v25, %v141_v29  ;;  %v398_v50 = vrot.slane %v3482_v11, 3  ;;  %v399_v51 = vrot.slane %v3488_v14, 3  ;;  %2453 = vmatprep.subr.bf16.mxu0 %v3107_v7  ;;  %v401_v53 = vrot.slane %v3493_v15, 3 }
  0x36   :  { %v144_v47 = vsel %vm97_vm0, %v141_v29, %v143_v30  ;;  %v530_v56 = vrot.slane %v3493_v15, 4  ;;  %v145_v3 = vrot.slane %v60_v52, 1  ;;  %v147_v6 = vrot.slane %v3533_v59, 1 }
  0x37   :  { %2796 = vrot.lane.b32.xlu0 %v2795_v20, %s3108_s21  ;;  %v2830_v20 = vpack.i.bf16 %v522_v62, %v519_v61  ;;  %v2855_v61 = vpack.i.bf16 %v144_v47, %v142_v46  ;;  %v400_v63 = vsel %vm355_vm1, %v398_v50, %v399_v51  ;;  %v402_v9 = vsel %vm355_vm1, %v399_v51, %v401_v53 }
  0x38   :  { %2801 = vrot.lane.b32.xlu1 %v2800_v21, %s3110_s27  ;;  %v266_v21 = vsel %vm226_vm2, %v263_v31, %v265_v60  ;;  %v526_v31 = vsel %vm484_vm3, %v523_v10, %v525_v13  ;;  %v3538_v60 = vld [vmem:[%s4270_s0 + $0xe8] sm:$0xff]  ;;  %v274_v13 = vrot.slane %v60_v52, 2  ;;  %v146_v24 = vsel %vm97_vm0, %v143_v30, %v145_v3 }
  0x39   :  { %v2840_v37 = vpack.i.bf16 %v268_v23, %v266_v21  ;;  %v2850_v45 = vpack.i.bf16 %v526_v31, %v524_v28  ;;  %v148_v8 = vrot.slane %v3538_v60, 1  ;;  %v277_v21 = vrot.slane %v3538_v60, 2  ;;  %v3560_v31 = vld [vmem:[%s4270_s0 + $0xf0] sm:$0xff] }
  0x3a   :  { %v275_v26 = vsel %vm226_vm2, %v272_v35, %v274_v13  ;;  %v403_v27 = vrot.slane %v60_v52, 3  ;;  %v405_v28 = vrot.slane %v3533_v59, 3  ;;  %v406_v29 = vrot.slane %v3538_v60, 3 }
  0x3b   :  { %2806 = vrot.lane.b32.xlu0 %v2805_v32, %s3109_s22  ;;  %v269_v32 = vrot.slane %v3482_v11, 2  ;;  %v149_v25 = vsel %vm97_vm0, %v147_v6, %v148_v8  ;;  %v534_v30 = vrot.slane %v3533_v59, 4  ;;  %v279_v51 = vrot.slane %v3560_v31, 2 }
  0x3c   :  { %2811 = vrot.lane.b32.xlu1 %v2810_v33, %s3111_s28  ;;  %v270_v33 = vrot.slane %v3488_v14, 2  ;;  %v2875_v42 = vpack.i.bf16 %v149_v25, %v146_v24  ;;  %v404_v46 = vsel %vm355_vm1, %v401_v53, %v403_v27  ;;  %v407_v47 = vsel %vm355_vm1, %v405_v28, %v406_v29 }
  0x3d   :  { %v537_v6 = vrot.slane %v3560_v31, 4  ;;  %vm613_vm4 = vcmask 228352   ;;  %vm638_vm5 = vcmask 457728   ;;  %vm663_vm6 = vcmask 687104  }
  0x3e   :  { %v271_v48 = vsel %vm226_vm2, %v269_v32, %v270_v33  ;;  %v273_v49 = vsel %vm226_vm2, %v270_v33, %v272_v35  ;;  %v532_v33 = vrot.slane %v60_v52, 4  ;;  %v64_v35 = vld [vmem:[%s4270_s0 + $0xf8] sm:$0xf]  ;;  %vm688_vm7 = vcmask 916480  }
  0x3f   :  { %2816 = vrot.lane.b32.xlu0 %v2815_v54, %s3108_s21  ;;  %v527_v54 = vrot.slane %v3482_v11, 4  ;;  %v2860_v62 = vpack.i.bf16 %v273_v49, %v271_v48  ;;  %v152_v48 = vrot.slane %v64_v35, 1  ;;  %v281_v52 = vrot.slane %v64_v35, 2 }
  0x40   :  { %2821 = vrot.lane.b32.xlu1 %v2820_v55, %s3110_s27  ;;  %v528_v55 = vrot.slane %v3488_v14, 4  ;;  %v533_v49 = vsel %vm484_vm3, %v530_v56, %v532_v33  ;;  %vm815_vm8 = vcmask 97280   ;;  %vm1068_vm9 = vcmask 785408  }
  0x41   :  { %v282_v3 = vsel %vm226_vm2, %v279_v51, %v281_v52  ;;  %vm1530_vm10 = vcmask 1040384   ;;  %vm1539_vm11 = vcmask 1041408   ;;  %vm1548_vm12 = vcmask 1042432  }
  0x42   :  { %v529_v10 = vsel %vm484_vm3, %v527_v54, %v528_v55  ;;  %v2885_v54 = vpack.i.bf16 %v407_v47, %v404_v46  ;;  %vm1854_vm13 = vcmask 130048   ;;  %vm1863_vm14 = vcmask 523264  }
  0x43   :  { %2826 = vrot.lane.b32.xlu0 %v2825_v12, %s3109_s22  ;;  %v531_v12 = vsel %vm484_vm3, %v528_v55, %v530_v56  ;;  %v280_v56 = vsel %vm226_vm2, %v277_v21, %v279_v51  ;;  %vm1837_vm15 = vcmask 392192  }
  0x44   :  { %2831 = vrot.lane.b32.xlu1 %v2830_v20, %s3111_s28  ;;  %v276_v20 = vrot.slane %v3533_v59, 2  ;;  %v2870_v23 = vpack.i.bf16 %v531_v12, %v529_v10 }
  0x46   :  { %v278_v32 = vsel %vm226_vm2, %v276_v20, %v277_v21 }
  0x47   :  { %2836 = vrot.lane.b32.xlu0 %v2835_v22, %s3108_s21  ;;  %v2865_v22 = vpack.i.bf16 %v402_v9, %v400_v63  ;;  %v410_v63 = vrot.slane %v64_v35, 3  ;;  %v539_v9 = vrot.slane %v64_v35, 4 }
  0x48   :  { %2841 = vrot.lane.b32.xlu1 %v2840_v37, %s3110_s27  ;;  %v535_v37 = vrot.slane %v3538_v60, 4 }
  0x4a   :  { %v536_v50 = vsel %vm484_vm3, %v534_v30, %v535_v37  ;;  %v538_v20 = vsel %vm484_vm3, %v535_v37, %v537_v6 }
  0x4b   :  { %2846 = vrot.lane.b32.xlu0 %v2845_v43, %s3109_s22  ;;  %v150_v43 = vrot.slane %v3560_v31, 1 }
  0x4c   :  { %2851 = vrot.lane.b32.xlu1 %v2850_v45, %s3111_s28  ;;  %v2880_v45 = vpack.i.bf16 %v278_v32, %v275_v26 }
  0x4d   :  { %v151_v55 = vsel %vm97_vm0, %v148_v8, %v150_v43  ;;  %v153_v53 = vsel %vm97_vm0, %v150_v43, %v152_v48  ;;  %v2900_v8 = vpack.i.bf16 %v282_v3, %v280_v56 }
  0x4e   :  { %v2895_v10 = vpack.i.bf16 %v153_v53, %v151_v55 }
  0x4f   :  { %2856 = vrot.lane.b32.xlu0 %v2855_v61, %s3108_s21  ;;  %v2890_v61 = vpack.i.bf16 %v536_v50, %v533_v49 }
  0x50   :  { %2861 = vrot.lane.b32.xlu1 %v2860_v62, %s3110_s27  ;;  %v408_v62 = vrot.slane %v3560_v31, 3 }
  0x52   :  { %v409_v12 = vsel %vm355_vm1, %v406_v29, %v408_v62  ;;  %v411_v13 = vsel %vm355_vm1, %v408_v62, %v410_v63 }
  0x53   :  { %2866 = vrot.lane.b32.xlu0 %v2865_v22, %s3109_s22  ;;  %v540_v22 = vsel %vm484_vm3, %v537_v6, %v539_v9  ;;  %v2905_v21 = vpack.i.bf16 %v411_v13, %v409_v12 }
  0x54   :  { %2871 = vrot.lane.b32.xlu1 %v2870_v23, %s3111_s28  ;;  %v2910_v23 = vpack.i.bf16 %v540_v22, %v538_v20 }
  0x57   :  { %2876 = vrot.lane.b32.xlu0 %v2875_v42, %s3108_s21 }
  0x58   :  { %2881 = vrot.lane.b32.xlu1 %v2880_v45, %s3110_s27 }
  0x5b   :  { %2886 = vrot.lane.b32.xlu0 %v2885_v54, %s3109_s22 }
  0x5c   :  { %2891 = vrot.lane.b32.xlu1 %v2890_v61, %s3111_s28 }
  0x5f   :  { %2896 = vrot.lane.b32.xlu0 %v2895_v10, %s3108_s21 }
  0x60   :  { %2901 = vrot.lane.b32.xlu1 %v2900_v8, %s3110_s27 }
  0x63   :  { %2906 = vrot.lane.b32.xlu0 %v2905_v21, %s3109_s22 }
  0x64   :  { %2911 = vrot.lane.b32.xlu1 %v2910_v23, %s3111_s28 }
  0x79   :  { %v2677_v24 = vpop.permute.xlu0 %2676 }
  0x7a   :  { %v2687_v25 = vpop.permute.xlu1 %2686  ;;  %v2679_v26 = vunpack.i.h.bf16 %v2677_v24  ;;  %v2678_v27 = vunpack.i.l.bf16 %v2677_v24 }
  0x7b   :  { %v2689_v29 = vunpack.i.h.bf16 %v2687_v25  ;;  %v2688_v32 = vunpack.i.l.bf16 %v2687_v25 }
  0x7c   :  { %v615_v35 = vsel %vm613_vm4, %v3174_v1, %v2679_v26  ;;  %v614_v42 = vsel %vm613_vm4, %v3169_v0, %v2678_v27 }
  0x7d   :  { %v2682_v28 = vpop.permute.xlu0 %2681 }
  0x7e   :  { %v2684_v33 = vunpack.i.h.bf16 %v2682_v28  ;;  %v2683_v30 = vunpack.i.l.bf16 %v2682_v28  ;;  %v2692_v37 = vpop.permute.xlu1 %2691 }
  0x7f   :  { %v2694_v43 = vunpack.i.h.bf16 %v2692_v37  ;;  %v2693_v45 = vunpack.i.l.bf16 %v2692_v37 }
  0x80   :  { %v639_v46 = vsel %vm638_vm5, %v614_v42, %v2683_v30  ;;  %v640_v47 = vsel %vm638_vm5, %v615_v35, %v2684_v33 }
  0x81   :  { %v2697_v48 = vpop.permute.xlu0 %2696  ;;  %v714_v49 = vpack.c.bf16 %v2694_v43, %v2693_v45  ;;  %v664_v50 = vsel %vm663_vm6, %v639_v46, %v2688_v32  ;;  %v665_v51 = vsel %vm663_vm6, %v640_v47, %v2689_v29 }
  0x82   :  { %v2699_v52 = vunpack.i.h.bf16 %v2697_v48  ;;  %v2698_v54 = vunpack.i.l.bf16 %v2697_v48  ;;  %v2702_v55 = vpop.permute.xlu1 %2701  ;;  %v689_v1 = vsel %vm688_vm7, %v664_v50, %v2693_v45  ;;  %v690_v0 = vsel %vm688_vm7, %v665_v51, %v2694_v43 }
  0x83   :  { %v2704_v61 = vunpack.i.h.bf16 %v2702_v55  ;;  %v2703_v53 = vunpack.i.l.bf16 %v2702_v55  ;;  %2508 = vmatprep.mubr.msk.bf16.mxu0 %vm815_vm8, %v714_v49  ;;  %v713_v62 = vpack.c.bf16 %v690_v0, %v689_v1 }
  0x84   :  { %v617_v63 = vsel %vm613_vm4, %v3200_v17, %v2699_v52  ;;  %v616_v56 = vsel %vm613_vm4, %v3179_v2, %v2698_v54 }
  0x85   :  { %v641_v3 = vsel %vm638_vm5, %v616_v56, %v2703_v53  ;;  %v642_v6 = vsel %vm638_vm5, %v617_v63, %v2704_v61  ;;  %v2707_v9 = vpop.permute.xlu0 %2706  ;;  %888 = vmatmul.mubr.bf16.vlgmr.msra.gmra.mrb[0].mxu0 %v713_v62 }
  0x86   :  { %v2709_v10 = vunpack.i.h.bf16 %v2707_v9  ;;  %v2708_v8 = vunpack.i.l.bf16 %v2707_v9  ;;  %v2712_v12 = vpop.permute.xlu1 %2711 }
  0x87   :  { %v2714_v13 = vunpack.i.h.bf16 %v2712_v12  ;;  %v2713_v20 = vunpack.i.l.bf16 %v2712_v12 }
  0x88   :  { %v666_v22 = vsel %vm663_vm6, %v641_v3, %v2708_v8  ;;  %v667_v21 = vsel %vm663_vm6, %v642_v6, %v2709_v10 }
  0x89   :  { %v716_v23 = vpack.c.bf16 %v2714_v13, %v2713_v20  ;;  %v2717_v17 = vpop.permute.xlu0 %2716  ;;  %v691_v24 = vsel %vm688_vm7, %v666_v22, %v2713_v20  ;;  %v692_v2 = vsel %vm688_vm7, %v667_v21, %v2714_v13 }
  0x8a   :  { %v2719_v25 = vunpack.i.h.bf16 %v2717_v17  ;;  %v2718_v26 = vunpack.i.l.bf16 %v2717_v17  ;;  %v2722_v27 = vpop.permute.xlu1 %2721  ;;  %v715_v28 = vpack.c.bf16 %v692_v2, %v691_v24 }
  0x8b   :  { %v2724_v29 = vunpack.i.h.bf16 %v2722_v27  ;;  %v2723_v32 = vunpack.i.l.bf16 %v2722_v27  ;;  %2509 = vmatprep.mubr.msk.bf16.mxu0 %vm815_vm8, %v716_v23 }
  0x8c   :  { %v619_v33 = vsel %vm613_vm4, %v3226_v39, %v2719_v25  ;;  %v618_v30 = vsel %vm613_vm4, %v3205_v18, %v2718_v26 }
  0x8d   :  { %v643_v37 = vsel %vm638_vm5, %v618_v30, %v2723_v32  ;;  %v644_v35 = vsel %vm638_vm5, %v619_v33, %v2724_v29  ;;  %v2727_v42 = vpop.permute.xlu0 %2726  ;;  %896 = vmatmul.mubr.bf16.gmra.mrb[4].mxu0 %v715_v28 }
  0x8e   :  { %v2729_v43 = vunpack.i.h.bf16 %v2727_v42  ;;  %v2728_v45 = vunpack.i.l.bf16 %v2727_v42  ;;  %v2732_v46 = vpop.permute.xlu1 %2731 }
  0x8f   :  { %v2734_v47 = vunpack.i.h.bf16 %v2732_v46  ;;  %v2733_v48 = vunpack.i.l.bf16 %v2732_v46 }
  0x90   :  { %v668_v49 = vsel %vm663_vm6, %v643_v37, %v2728_v45  ;;  %v669_v50 = vsel %vm663_vm6, %v644_v35, %v2729_v43 }
  0x91   :  { %v718_v51 = vpack.c.bf16 %v2734_v47, %v2733_v48  ;;  %v2737_v39 = vpop.permute.xlu0 %2736  ;;  %v693_v52 = vsel %vm688_vm7, %v668_v49, %v2733_v48  ;;  %v694_v18 = vsel %vm688_vm7, %v669_v50, %v2734_v47 }
  0x92   :  { %v2739_v54 = vunpack.i.h.bf16 %v2737_v39  ;;  %v2738_v55 = vunpack.i.l.bf16 %v2737_v39  ;;  %v2742_v1 = vpop.permute.xlu1 %2741  ;;  %v717_v0 = vpack.c.bf16 %v694_v18, %v693_v52 }
  0x93   :  { %v2744_v61 = vunpack.i.h.bf16 %v2742_v1  ;;  %v2743_v53 = vunpack.i.l.bf16 %v2742_v1  ;;  %2510 = vmatprep.mubr.msk.bf16.mxu0 %vm815_vm8, %v718_v51 }
  0x94   :  { %v621_v62 = vsel %vm613_vm4, %v3252_v58, %v2739_v54  ;;  %v620_v63 = vsel %vm613_vm4, %v3247_v57, %v2738_v55 }
  0x95   :  { %v645_v56 = vsel %vm638_vm5, %v620_v63, %v2743_v53  ;;  %v646_v3 = vsel %vm638_vm5, %v621_v62, %v2744_v61  ;;  %v2747_v6 = vpop.permute.xlu0 %2746  ;;  %904 = vmatmul.mubr.bf16.gmra.mrb[8].mxu0 %v717_v0 }
  0x96   :  { %v2749_v9 = vunpack.i.h.bf16 %v2747_v6  ;;  %v2748_v10 = vunpack.i.l.bf16 %v2747_v6  ;;  %v2752_v8 = vpop.permute.xlu1 %2751 }
  0x97   :  { %v2754_v12 = vunpack.i.h.bf16 %v2752_v8  ;;  %v2753_v13 = vunpack.i.l.bf16 %v2752_v8 }
  0x98   :  { %v670_v20 = vsel %vm663_vm6, %v645_v56, %v2748_v10  ;;  %v671_v22 = vsel %vm663_vm6, %v646_v3, %v2749_v9 }
  0x99   :  { %v720_v21 = vpack.c.bf16 %v2754_v12, %v2753_v13  ;;  %v2757_v58 = vpop.permute.xlu0 %2756  ;;  %v695_v23 = vsel %vm688_vm7, %v670_v20, %v2753_v13  ;;  %v696_v57 = vsel %vm688_vm7, %v671_v22, %v2754_v12 }
  0x9a   :  { %v2759_v17 = vunpack.i.h.bf16 %v2757_v58  ;;  %v2758_v24 = vunpack.i.l.bf16 %v2757_v58  ;;  %v2762_v2 = vpop.permute.xlu1 %2761  ;;  %v719_v25 = vpack.c.bf16 %v696_v57, %v695_v23 }
  0x9b   :  { %v2764_v26 = vunpack.i.h.bf16 %v2762_v2  ;;  %v2763_v27 = vunpack.i.l.bf16 %v2762_v2  ;;  %2511 = vmatprep.mubr.msk.bf16.mxu0 %vm815_vm8, %v720_v21 }
  0x9c   :  { %v623_v28 = vsel %vm613_vm4, %v3301_v34, %v2759_v17  ;;  %v622_v29 = vsel %vm613_vm4, %v3265_v5, %v2758_v24 }
  0x9d   :  { %v647_v32 = vsel %vm638_vm5, %v622_v29, %v2763_v27  ;;  %v648_v33 = vsel %vm638_vm5, %v623_v28, %v2764_v26  ;;  %v2767_v30 = vpop.permute.xlu0 %2766  ;;  %912 = vmatmul.mubr.bf16.gmra.mrb[12].mxu0 %v719_v25 }
  0x9e   :  { %v2769_v37 = vunpack.i.h.bf16 %v2767_v30  ;;  %v2768_v35 = vunpack.i.l.bf16 %v2767_v30  ;;  %v2772_v42 = vpop.permute.xlu1 %2771 }
  0x9f   :  { %v2774_v43 = vunpack.i.h.bf16 %v2772_v42  ;;  %v2773_v45 = vunpack.i.l.bf16 %v2772_v42 }
  0xa0   :  { %v672_v46 = vsel %vm663_vm6, %v647_v32, %v2768_v35  ;;  %v673_v47 = vsel %vm663_vm6, %v648_v33, %v2769_v37 }
  0xa1   :  { %v722_v48 = vpack.c.bf16 %v2774_v43, %v2773_v45  ;;  %v2777_v34 = vpop.permute.xlu0 %2776  ;;  %v697_v49 = vsel %vm688_vm7, %v672_v46, %v2773_v45  ;;  %v698_v5 = vsel %vm688_vm7, %v673_v47, %v2774_v43 }
  0xa2   :  { %v2779_v50 = vunpack.i.h.bf16 %v2777_v34  ;;  %v2778_v51 = vunpack.i.l.bf16 %v2777_v34  ;;  %v2782_v39 = vpop.permute.xlu1 %2781  ;;  %v721_v52 = vpack.c.bf16 %v698_v5, %v697_v49 }
  0xa3   :  { %v2784_v18 = vunpack.i.h.bf16 %v2782_v39  ;;  %v2783_v54 = vunpack.i.l.bf16 %v2782_v39  ;;  %2512 = vmatprep.mubr.msk.bf16.mxu0 %vm815_vm8, %v722_v48 }
  0xa4   :  { %v625_v55 = vsel %vm613_vm4, %v3344_v4, %v2779_v50  ;;  %v624_v1 = vsel %vm613_vm4, %v3316_v44, %v2778_v51 }
  0xa5   :  { %v649_v0 = vsel %vm638_vm5, %v624_v1, %v2783_v54  ;;  %v650_v61 = vsel %vm638_vm5, %v625_v55, %v2784_v18  ;;  %v2787_v53 = vpop.permute.xlu0 %2786  ;;  %920 = vmatmul.mubr.bf16.gmra.mrb[16].mxu0 %v721_v52 }
  0xa6   :  { %v2789_v62 = vunpack.i.h.bf16 %v2787_v53  ;;  %v2788_v63 = vunpack.i.l.bf16 %v2787_v53  ;;  %v2792_v56 = vpop.permute.xlu1 %2791 }
  0xa7   :  { %v2794_v3 = vunpack.i.h.bf16 %v2792_v56  ;;  %v2793_v6 = vunpack.i.l.bf16 %v2792_v56 }
  0xa8   :  { %v674_v9 = vsel %vm663_vm6, %v649_v0, %v2788_v63  ;;  %v675_v10 = vsel %vm663_vm6, %v650_v61, %v2789_v62 }
  0xa9   :  { %v724_v8 = vpack.c.bf16 %v2794_v3, %v2793_v6  ;;  %v2797_v4 = vpop.permute.xlu0 %2796  ;;  %v699_v12 = vsel %vm688_vm7, %v674_v9, %v2793_v6  ;;  %v700_v44 = vsel %vm688_vm7, %v675_v10, %v2794_v3 }
  0xaa   :  { %v2799_v13 = vunpack.i.h.bf16 %v2797_v4  ;;  %v2798_v20 = vunpack.i.l.bf16 %v2797_v4  ;;  %v2802_v22 = vpop.permute.xlu1 %2801  ;;  %v723_v21 = vpack.c.bf16 %v700_v44, %v699_v12 }
  0xab   :  { %v2804_v58 = vunpack.i.h.bf16 %v2802_v22  ;;  %v2803_v23 = vunpack.i.l.bf16 %v2802_v22  ;;  %2513 = vmatprep.mubr.msk.bf16.mxu0 %vm815_vm8, %v724_v8 }
  0xac   :  { %v627_v57 = vsel %vm613_vm4, %v3387_v40, %v2799_v13  ;;  %v626_v17 = vsel %vm613_vm4, %v3381_v36, %v2798_v20 }
  0xad   :  { %v651_v24 = vsel %vm638_vm5, %v626_v17, %v2803_v23  ;;  %v652_v2 = vsel %vm638_vm5, %v627_v57, %v2804_v58  ;;  %v2807_v25 = vpop.permute.xlu0 %2806  ;;  %928 = vmatmul.mubr.bf16.gmra.mrb[20].mxu0 %v723_v21 }
  0xae   :  { %v2809_v26 = vunpack.i.h.bf16 %v2807_v25  ;;  %v2808_v27 = vunpack.i.l.bf16 %v2807_v25  ;;  %v2812_v28 = vpop.permute.xlu1 %2811 }
  0xaf   :  { %v2814_v29 = vunpack.i.h.bf16 %v2812_v28  ;;  %v2813_v32 = vunpack.i.l.bf16 %v2812_v28 }
  0xb0   :  { %v676_v33 = vsel %vm663_vm6, %v651_v24, %v2808_v27  ;;  %v677_v30 = vsel %vm663_vm6, %v652_v2, %v2809_v26 }
  0xb1   :  { %v726_v37 = vpack.c.bf16 %v2814_v29, %v2813_v32  ;;  %v2817_v40 = vpop.permute.xlu0 %2816  ;;  %v701_v35 = vsel %vm688_vm7, %v676_v33, %v2813_v32  ;;  %v702_v36 = vsel %vm688_vm7, %v677_v30, %v2814_v29 }
  0xb2   :  { %v2819_v42 = vunpack.i.h.bf16 %v2817_v40  ;;  %v2818_v43 = vunpack.i.l.bf16 %v2817_v40  ;;  %v2822_v45 = vpop.permute.xlu1 %2821  ;;  %v725_v46 = vpack.c.bf16 %v702_v36, %v701_v35 }
  0xb3   :  { %v2824_v47 = vunpack.i.h.bf16 %v2822_v45  ;;  %v2823_v48 = vunpack.i.l.bf16 %v2822_v45  ;;  %2514 = vmatprep.mubr.msk.bf16.mxu0 %vm815_vm8, %v726_v37 }
  0xb4   :  { %v629_v34 = vsel %vm613_vm4, %v3432_v16, %v2819_v42  ;;  %v628_v49 = vsel %vm613_vm4, %v3392_v41, %v2818_v43 }
  0xb5   :  { %v653_v5 = vsel %vm638_vm5, %v628_v49, %v2823_v48  ;;  %v654_v50 = vsel %vm638_vm5, %v629_v34, %v2824_v47  ;;  %v2827_v51 = vpop.permute.xlu0 %2826  ;;  %936 = vmatmul.mubr.bf16.gmra.mrb[24].mxu0 %v725_v46 }
  0xb6   :  { %v2829_v39 = vunpack.i.h.bf16 %v2827_v51  ;;  %v2828_v52 = vunpack.i.l.bf16 %v2827_v51  ;;  %v2832_v18 = vpop.permute.xlu1 %2831 }
  0xb7   :  { %v2834_v54 = vunpack.i.h.bf16 %v2832_v18  ;;  %v2833_v55 = vunpack.i.l.bf16 %v2832_v18 }
  0xb8   :  { %v678_v1 = vsel %vm663_vm6, %v653_v5, %v2828_v52  ;;  %v679_v0 = vsel %vm663_vm6, %v654_v50, %v2829_v39 }
  0xb9   :  { %v728_v61 = vpack.c.bf16 %v2834_v54, %v2833_v55  ;;  %v2837_v16 = vpop.permute.xlu0 %2836  ;;  %v703_v53 = vsel %vm688_vm7, %v678_v1, %v2833_v55  ;;  %v704_v41 = vsel %vm688_vm7, %v679_v0, %v2834_v54 }
  0xba   :  { %v2839_v62 = vunpack.i.h.bf16 %v2837_v16  ;;  %v2838_v63 = vunpack.i.l.bf16 %v2837_v16  ;;  %v2842_v56 = vpop.permute.xlu1 %2841  ;;  %v727_v3 = vpack.c.bf16 %v704_v41, %v703_v53 }
  0xbb   :  { %v2844_v6 = vunpack.i.h.bf16 %v2842_v56  ;;  %v2843_v9 = vunpack.i.l.bf16 %v2842_v56  ;;  %2515 = vmatprep.mubr.msk.bf16.mxu0 %vm815_vm8, %v728_v61 }
  0xbc   :  { %v631_v10 = vsel %vm613_vm4, %v3455_v38, %v2839_v62  ;;  %v630_v8 = vsel %vm613_vm4, %v3437_v19, %v2838_v63 }
  0xbd   :  { %v655_v4 = vsel %vm638_vm5, %v630_v8, %v2843_v9  ;;  %v656_v12 = vsel %vm638_vm5, %v631_v10, %v2844_v6  ;;  %v2847_v44 = vpop.permute.xlu0 %2846  ;;  %944 = vmatmul.mubr.bf16.gmra.mrb[28].mxu0 %v727_v3 }
  0xbe   :  { %v2849_v13 = vunpack.i.h.bf16 %v2847_v44  ;;  %v2848_v20 = vunpack.i.l.bf16 %v2847_v44  ;;  %v2852_v22 = vpop.permute.xlu1 %2851 }
  0xbf   :  { %v2854_v21 = vunpack.i.h.bf16 %v2852_v22  ;;  %v2853_v58 = vunpack.i.l.bf16 %v2852_v22 }
  0xc0   :  { %v680_v23 = vsel %vm663_vm6, %v655_v4, %v2848_v20  ;;  %v681_v57 = vsel %vm663_vm6, %v656_v12, %v2849_v13 }
  0xc1   :  { %v730_v17 = vpack.c.bf16 %v2854_v21, %v2853_v58  ;;  %v2857_v38 = vpop.permute.xlu0 %2856  ;;  %v705_v24 = vsel %vm688_vm7, %v680_v23, %v2853_v58  ;;  %v706_v19 = vsel %vm688_vm7, %v681_v57, %v2854_v21 }
  0xc2   :  { %v2859_v2 = vunpack.i.h.bf16 %v2857_v38  ;;  %v2858_v25 = vunpack.i.l.bf16 %v2857_v38  ;;  %v2862_v26 = vpop.permute.xlu1 %2861  ;;  %v729_v27 = vpack.c.bf16 %v706_v19, %v705_v24 }
  0xc3   :  { %v2864_v28 = vunpack.i.h.bf16 %v2862_v26  ;;  %v2863_v29 = vunpack.i.l.bf16 %v2862_v26  ;;  %2516 = vmatprep.mubr.msk.bf16.mxu0 %vm815_vm8, %v730_v17 }
  0xc4   :  { %v633_v32 = vsel %vm613_vm4, %v3488_v14, %v2859_v2  ;;  %v632_v33 = vsel %vm613_vm4, %v3482_v11, %v2858_v25 }
  0xc5   :  { %v657_v30 = vsel %vm638_vm5, %v632_v33, %v2863_v29  ;;  %v658_v37 = vsel %vm638_vm5, %v633_v32, %v2864_v28  ;;  %v2867_v40 = vpop.permute.xlu0 %2866  ;;  %952 = vmatmul.mubr.bf16.gmra.mrb[32].mxu0 %v729_v27  ;;  %v3005_v28 = vld [vmem:[%s4272_s3 + $0x8] sm:$0xff]   ;;  %v3006_v29 = vld [vmem:[%s4272_s3 + $0x10] sm:$0xff]   ;;  %v3007_v32 = vld [vmem:[%s4272_s3 + $0x18] sm:$0xff]  }
  0xc6   :  { %v2869_v35 = vunpack.i.h.bf16 %v2867_v40  ;;  %v2868_v36 = vunpack.i.l.bf16 %v2867_v40  ;;  %v2872_v42 = vpop.permute.xlu1 %2871  ;;  %v3008_v33 = vld [vmem:[%s4272_s3 + $0x20] sm:$0xff]  }
  0xc7   :  { %v2874_v43 = vunpack.i.h.bf16 %v2872_v42  ;;  %v2873_v45 = vunpack.i.l.bf16 %v2872_v42 }
  0xc8   :  { %v682_v46 = vsel %vm663_vm6, %v657_v30, %v2868_v36  ;;  %v683_v47 = vsel %vm663_vm6, %v658_v37, %v2869_v35  ;;  %v3009_v30 = vld [vmem:[%s4272_s3 + $0x28] sm:$0xff]   ;;  %v3748_v37 = vld [vmem:[%s4273_s2] ss:$0 sm:$0xff] }
  0xc9   :  { %v732_v48 = vpack.c.bf16 %v2874_v43, %v2873_v45  ;;  %v2877_v14 = vpop.permute.xlu0 %2876  ;;  %v707_v34 = vsel %vm688_vm7, %v682_v46, %v2873_v45  ;;  %v708_v11 = vsel %vm688_vm7, %v683_v47, %v2874_v43 }
  0xca   :  { %v2879_v49 = vunpack.i.h.bf16 %v2877_v14  ;;  %v2878_v5 = vunpack.i.l.bf16 %v2877_v14  ;;  %v2882_v50 = vpop.permute.xlu1 %2881  ;;  %v731_v51 = vpack.c.bf16 %v708_v11, %v707_v34 }
  0xcb   :  { %v2884_v39 = vunpack.i.h.bf16 %v2882_v50  ;;  %v2883_v52 = vunpack.i.l.bf16 %v2882_v50  ;;  %2517 = vmatprep.mubr.msk.bf16.mxu0 %vm815_vm8, %v732_v48 }
  0xcc   :  { %v635_v18 = vsel %vm613_vm4, %v3533_v59, %v2879_v49  ;;  %v634_v54 = vsel %vm613_vm4, %v3493_v15, %v2878_v5 }
  0xcd   :  { %v659_v55 = vsel %vm638_vm5, %v634_v54, %v2883_v52  ;;  %v660_v1 = vsel %vm638_vm5, %v635_v18, %v2884_v39  ;;  %v2887_v0 = vpop.permute.xlu0 %2886  ;;  %960 = vmatmul.mubr.bf16.gmra.mrb[36].mxu0 %v731_v51 }
  0xce   :  { %v2889_v61 = vunpack.i.h.bf16 %v2887_v0  ;;  %v2888_v16 = vunpack.i.l.bf16 %v2887_v0  ;;  %v2892_v53 = vpop.permute.xlu1 %2891 }
  0xcf   :  { %v2894_v41 = vunpack.i.h.bf16 %v2892_v53  ;;  %v2893_v62 = vunpack.i.l.bf16 %v2892_v53 }
  0xd0   :  { %v684_v63 = vsel %vm663_vm6, %v659_v55, %v2888_v16  ;;  %v685_v56 = vsel %vm663_vm6, %v660_v1, %v2889_v61 }
  0xd1   :  { %v734_v3 = vpack.c.bf16 %v2894_v41, %v2893_v62  ;;  %v2897_v59 = vpop.permute.xlu0 %2896  ;;  %v709_v6 = vsel %vm688_vm7, %v684_v63, %v2893_v62  ;;  %v710_v15 = vsel %vm688_vm7, %v685_v56, %v2894_v41 }
  0xd2   :  { %v2899_v9 = vunpack.i.h.bf16 %v2897_v59  ;;  %v2898_v10 = vunpack.i.l.bf16 %v2897_v59  ;;  %v2902_v8 = vpop.permute.xlu1 %2901  ;;  %v733_v4 = vpack.c.bf16 %v710_v15, %v709_v6 }
  0xd3   :  { %v2904_v12 = vunpack.i.h.bf16 %v2902_v8  ;;  %v2903_v44 = vunpack.i.l.bf16 %v2902_v8  ;;  %2518 = vmatprep.mubr.msk.bf16.mxu0 %vm815_vm8, %v734_v3 }
  0xd4   :  { %v637_v13 = vsel %vm613_vm4, %v3560_v31, %v2899_v9  ;;  %v636_v20 = vsel %vm613_vm4, %v3538_v60, %v2898_v10  ;;  %v3004_v31 = vld [vmem:[%s4272_s3] sm:$0xff]   ;;  %vm2282_vm4 = vcmask 1045509  }
  0xd5   :  { %v661_v22 = vsel %vm638_vm5, %v636_v20, %v2903_v44  ;;  %v662_v21 = vsel %vm638_vm5, %v637_v13, %v2904_v12  ;;  %v2907_v58 = vpop.permute.xlu0 %2906  ;;  %968 = vmatmul.mubr.bf16.gmra.mrb[40].mxu0 %v733_v4  ;;  %2610 = vmatprep.subr.bf16.mxu1 %v3004_v31  ;;  %vm2285_vm5 = vcmask 1046534  }
  0xd6   :  { %v2909_v23 = vunpack.i.h.bf16 %v2907_v58  ;;  %v2908_v57 = vunpack.i.l.bf16 %v2907_v58  ;;  %v2912_v17 = vpop.permute.xlu1 %2911  ;;  %2611 = vmatpush3.bf16.msra.mxu1 %v3004_v31 }
  0xd7   :  { %v2914_v38 = vunpack.i.h.bf16 %v2912_v17  ;;  %v2913_v24 = vunpack.i.l.bf16 %v2912_v17  ;;  %2612 = vmatprep.subr.bf16.mxu1 %v3005_v28 }
  0xd8   :  { %v686_v19 = vsel %vm663_vm6, %v661_v22, %v2908_v57  ;;  %v687_v2 = vsel %vm663_vm6, %v662_v21, %v2909_v23  ;;  %vm2288_vm6 = vcmask 1047559  }
  0xd9   :  { %v736_v60 = vpack.c.bf16 %v2914_v38, %v2913_v24  ;;  %v711_v25 = vsel %vm688_vm7, %v686_v19, %v2913_v24  ;;  %v712_v26 = vsel %vm688_vm7, %v687_v2, %v2914_v38 }
  0xda   :  { %v735_v27 = vpack.c.bf16 %v712_v26, %v711_v25  ;;  %2613 = vmatpush3.bf16.msra.mxu1 %v3005_v28 }
  0xdb   :  { %2519 = vmatprep.mubr.msk.bf16.mxu0 %vm815_vm8, %v736_v60  ;;  %2614 = vmatprep.subr.bf16.mxu1 %v3006_v29 }
  0xdd   :  { %976 = vmatmul.mubr.bf16.gmra.mrb[44].mxu0 %v735_v27 }
  0xde   :  { %2615 = vmatpush3.bf16.msra.mxu1 %v3006_v29 }
  0xdf   :  { %2616 = vmatprep.subr.bf16.mxu1 %v3007_v32 }
  0xe2   :  { %2617 = vmatpush3.bf16.msra.mxu1 %v3007_v32 }
  0xe3   :  { %2618 = vmatprep.subr.bf16.mxu1 %v3008_v33 }
  0xe6   :  { %2619 = vmatpush3.bf16.msra.mxu1 %v3008_v33 }
  0xe7   :  { %2620 = vmatprep.subr.bf16.mxu1 %v3009_v30 }
  0xea   :  { %2621 = vmatpush3.bf16.msra.mxu1 %v3009_v30 }
  0xeb   :  { %2019 = vmatprep.subr.bf16.mxu1 %v3107_v7 }
 0x158   :  { %v889_v40 = vpop.f32.mrb[0].mxu0 }
 0x159   :  { %v890_v35 = vadd.f32 %v3748_v37, %v889_v40  ;;  %v891_v36 = vpop.f32.mrb[1].mxu0 }
 0x15a   :  { %v892_v42 = vpop.f32.mrb[2].mxu0 }
 0x15b   :  { %v893_v43 = vadd.f32 %v3748_v37, %v892_v42  ;;  %v894_v45 = vpop.f32.mrb[3].mxu0  ;;  %3043 = vtanh.f32 %v890_v35 }
 0x15d   :  { %3045 = vtanh.f32 %v893_v43 }
 0x160   :  { %v897_v46 = vpop.f32.mrb[4].mxu0 }
 0x161   :  { %v898_v47 = vadd.f32 %v3748_v37, %v897_v46  ;;  %v899_v48 = vpop.f32.mrb[5].mxu0 }
 0x162   :  { %v900_v14 = vpop.f32.mrb[6].mxu0 }
 0x163   :  { %v901_v34 = vadd.f32 %v3748_v37, %v900_v14  ;;  %v902_v11 = vpop.f32.mrb[7].mxu0  ;;  %3047 = vtanh.f32 %v898_v47 }
 0x165   :  { %3049 = vtanh.f32 %v901_v34  ;;  %v3044_v49 = vpop.eup %3043 }
 0x167   :  { %v3046_v5 = vpop.eup %3045 }
 0x168   :  { %v905_v50 = vpop.f32.mrb[8].mxu0  ;;  %v1008_v51 = vpack.c.bf16 %v3046_v5, %v3044_v49 }
 0x169   :  { %v906_v39 = vadd.f32 %v3748_v37, %v905_v50  ;;  %v907_v52 = vpop.f32.mrb[9].mxu0 }
 0x16a   :  { %v908_v18 = vpop.f32.mrb[10].mxu0  ;;  %2622 = vmatprep.mubr.msk.bf16.mxu1 %vm1068_vm9, %v1008_v51 }
 0x16b   :  { %v909_v54 = vadd.f32 %v3748_v37, %v908_v18  ;;  %v910_v55 = vpop.f32.mrb[11].mxu0  ;;  %3051 = vtanh.f32 %v906_v39 }
 0x16d   :  { %3053 = vtanh.f32 %v909_v54  ;;  %v3048_v1 = vpop.eup %3047 }
 0x16f   :  { %v3050_v0 = vpop.eup %3049 }
 0x170   :  { %v913_v61 = vpop.f32.mrb[12].mxu0  ;;  %v1009_v16 = vpack.c.bf16 %v3050_v0, %v3048_v1 }
 0x171   :  { %v914_v53 = vadd.f32 %v3748_v37, %v913_v61  ;;  %v915_v41 = vpop.f32.mrb[13].mxu0 }
 0x172   :  { %v916_v62 = vpop.f32.mrb[14].mxu0  ;;  %2623 = vmatmul.mubr.msk.bf16.vlgmr.msra.gmra.mrb[0].mxu1 %vm1068_vm9, %v1009_v16 }
 0x173   :  { %v917_v63 = vadd.f32 %v3748_v37, %v916_v62  ;;  %v918_v56 = vpop.f32.mrb[15].mxu0  ;;  %3055 = vtanh.f32 %v914_v53 }
 0x175   :  { %3057 = vtanh.f32 %v917_v63  ;;  %v3052_v3 = vpop.eup %3051 }
 0x177   :  { %v3054_v59 = vpop.eup %3053 }
 0x178   :  { %v921_v6 = vpop.f32.mrb[16].mxu0  ;;  %v1010_v15 = vpack.c.bf16 %v3054_v59, %v3052_v3 }
 0x179   :  { %v922_v9 = vadd.f32 %v3748_v37, %v921_v6  ;;  %v923_v10 = vpop.f32.mrb[17].mxu0 }
 0x17a   :  { %v924_v8 = vpop.f32.mrb[18].mxu0  ;;  %2626 = vmatprep.mubr.msk.bf16.mxu1 %vm1068_vm9, %v1010_v15 }
 0x17b   :  { %v925_v4 = vadd.f32 %v3748_v37, %v924_v8  ;;  %v926_v12 = vpop.f32.mrb[19].mxu0  ;;  %3059 = vtanh.f32 %v922_v9 }
 0x17d   :  { %3061 = vtanh.f32 %v925_v4  ;;  %v3056_v44 = vpop.eup %3055 }
 0x17f   :  { %v3058_v13 = vpop.eup %3057 }
 0x180   :  { %v929_v20 = vpop.f32.mrb[20].mxu0  ;;  %v1011_v22 = vpack.c.bf16 %v3058_v13, %v3056_v44 }
 0x181   :  { %v930_v21 = vadd.f32 %v3748_v37, %v929_v20  ;;  %v931_v58 = vpop.f32.mrb[21].mxu0 }
 0x182   :  { %v932_v23 = vpop.f32.mrb[22].mxu0  ;;  %2627 = vmatmul.mubr.msk.bf16.gmra.mrb[4].mxu1 %vm1068_vm9, %v1011_v22 }
 0x183   :  { %v933_v57 = vadd.f32 %v3748_v37, %v932_v23  ;;  %v934_v17 = vpop.f32.mrb[23].mxu0  ;;  %3063 = vtanh.f32 %v930_v21 }
 0x184   :  { %v3012_v17 = vld [vmem:[%s4274_s4 + $0x10] sm:$0xff]  }
 0x185   :  { %3065 = vtanh.f32 %v933_v57  ;;  %v3060_v38 = vpop.eup %3059  ;;  %v3010_v57 = vld [vmem:[%s4274_s4] sm:$0xff]  }
 0x186   :  { %2020 = vmatpush1.bf16.msra.mxu1 %v3010_v57  ;;  %v3022_v57 = vld [vmem:[%s4274_s4 + $0x60] sm:$0xff]  }
 0x187   :  { %v3062_v24 = vpop.eup %3061  ;;  %2021 = vmatprep.subr.bf16.mxu1 %v3107_v7 }
 0x188   :  { %v937_v19 = vpop.f32.mrb[24].mxu0  ;;  %v1012_v2 = vpack.c.bf16 %v3062_v24, %v3060_v38  ;;  %v3013_v38 = vld [vmem:[%s4274_s4 + $0x18] sm:$0xff]   ;;  %v3014_v24 = vld [vmem:[%s4274_s4 + $0x20] sm:$0xff]  }
 0x189   :  { %v938_v31 = vadd.f32 %v3748_v37, %v937_v19  ;;  %v939_v60 = vpop.f32.mrb[25].mxu0  ;;  %v3015_v19 = vld [vmem:[%s4274_s4 + $0x28] sm:$0xff]  }
 0x18a   :  { %v940_v25 = vpop.f32.mrb[26].mxu0  ;;  %2630 = vmatprep.mubr.msk.bf16.mxu1 %vm1068_vm9, %v1012_v2 }
 0x18b   :  { %v941_v26 = vadd.f32 %v3748_v37, %v940_v25  ;;  %v942_v27 = vpop.f32.mrb[27].mxu0  ;;  %3067 = vtanh.f32 %v938_v31  ;;  %v3016_v31 = vld [vmem:[%s4274_s4 + $0x30] sm:$0xff]  }
 0x18d   :  { %3069 = vtanh.f32 %v941_v26  ;;  %v3064_v28 = vpop.eup %3063 }
 0x18f   :  { %v3066_v29 = vpop.eup %3065 }
 0x190   :  { %v945_v32 = vpop.f32.mrb[28].mxu0  ;;  %v1013_v33 = vpack.c.bf16 %v3066_v29, %v3064_v28 }
 0x191   :  { %v946_v30 = vadd.f32 %v3748_v37, %v945_v32  ;;  %v947_v40 = vpop.f32.mrb[29].mxu0  ;;  %v3017_v32 = vld [vmem:[%s4274_s4 + $0x38] sm:$0xff]  }
 0x192   :  { %v948_v35 = vpop.f32.mrb[30].mxu0  ;;  %2631 = vmatmul.mubr.msk.bf16.gmra.mrb[8].mxu1 %vm1068_vm9, %v1013_v33 }
 0x193   :  { %v949_v36 = vadd.f32 %v3748_v37, %v948_v35  ;;  %v950_v42 = vpop.f32.mrb[31].mxu0  ;;  %3071 = vtanh.f32 %v946_v30 }
 0x195   :  { %3073 = vtanh.f32 %v949_v36  ;;  %v3068_v43 = vpop.eup %3067  ;;  %v3018_v36 = vld [vmem:[%s4274_s4 + $0x40] sm:$0xff]  }
 0x197   :  { %v3070_v45 = vpop.eup %3069 }
 0x198   :  { %v953_v46 = vpop.f32.mrb[32].mxu0  ;;  %v1014_v47 = vpack.c.bf16 %v3070_v45, %v3068_v43 }
 0x199   :  { %v954_v48 = vadd.f32 %v3748_v37, %v953_v46  ;;  %v955_v14 = vpop.f32.mrb[33].mxu0 }
 0x19a   :  { %v956_v34 = vpop.f32.mrb[34].mxu0  ;;  %2634 = vmatprep.mubr.msk.bf16.mxu1 %vm1068_vm9, %v1014_v47 }
 0x19b   :  { %v957_v11 = vadd.f32 %v3748_v37, %v956_v34  ;;  %v958_v49 = vpop.f32.mrb[35].mxu0  ;;  %3075 = vtanh.f32 %v954_v48  ;;  %v3019_v34 = vld [vmem:[%s4274_s4 + $0x48] sm:$0xff]  }
 0x19d   :  { %3077 = vtanh.f32 %v957_v11  ;;  %v3072_v5 = vpop.eup %3071 }
 0x19f   :  { %v3074_v50 = vpop.eup %3073 }
 0x1a0   :  { %v961_v51 = vpop.f32.mrb[36].mxu0  ;;  %v1015_v39 = vpack.c.bf16 %v3074_v50, %v3072_v5 }
 0x1a1   :  { %v962_v52 = vadd.f32 %v3748_v37, %v961_v51  ;;  %v963_v18 = vpop.f32.mrb[37].mxu0 }
 0x1a2   :  { %v964_v54 = vpop.f32.mrb[38].mxu0  ;;  %2635 = vmatmul.mubr.msk.bf16.gmra.mrb[12].mxu1 %vm1068_vm9, %v1015_v39 }
 0x1a3   :  { %v965_v55 = vadd.f32 %v3748_v37, %v964_v54  ;;  %v966_v1 = vpop.f32.mrb[39].mxu0  ;;  %3079 = vtanh.f32 %v962_v52 }
 0x1a4   :  { %v3020_v1 = vld [vmem:[%s4274_s4 + $0x50] sm:$0xff]  }
 0x1a5   :  { %3081 = vtanh.f32 %v965_v55  ;;  %v3076_v0 = vpop.eup %3075 }
 0x1a7   :  { %v3078_v61 = vpop.eup %3077 }
 0x1a8   :  { %v969_v16 = vpop.f32.mrb[40].mxu0  ;;  %v1016_v53 = vpack.c.bf16 %v3078_v61, %v3076_v0 }
 0x1a9   :  { %v970_v41 = vadd.f32 %v3748_v37, %v969_v16  ;;  %v971_v62 = vpop.f32.mrb[41].mxu0 }
 0x1aa   :  { %v972_v63 = vpop.f32.mrb[42].mxu0  ;;  %2638 = vmatprep.mubr.msk.bf16.mxu1 %vm1068_vm9, %v1016_v53 }
 0x1ab   :  { %v973_v56 = vadd.f32 %v3748_v37, %v972_v63  ;;  %v974_v3 = vpop.f32.mrb[43].mxu0  ;;  %3083 = vtanh.f32 %v970_v41 }
 0x1ad   :  { %3085 = vtanh.f32 %v973_v56  ;;  %v3080_v59 = vpop.eup %3079 }
 0x1af   :  { %v3082_v6 = vpop.eup %3081 }
 0x1b0   :  { %v977_v15 = vpop.f32.mrb[44].mxu0  ;;  %v1017_v9 = vpack.c.bf16 %v3082_v6, %v3080_v59 }
 0x1b1   :  { %v978_v10 = vadd.f32 %v3748_v37, %v977_v15  ;;  %v979_v8 = vpop.f32.mrb[45].mxu0 }
 0x1b2   :  { %v980_v4 = vpop.f32.mrb[46].mxu0  ;;  %2639 = vmatmul.mubr.msk.bf16.gmra.mrb[16].mxu1 %vm1068_vm9, %v1017_v9  ;;  %v3021_v9 = vld [vmem:[%s4274_s4 + $0x58] sm:$0xff]  }
 0x1b3   :  { %v981_v12 = vadd.f32 %v3748_v37, %v980_v4  ;;  %v982_v44 = vpop.f32.mrb[47].mxu0  ;;  %3087 = vtanh.f32 %v978_v10  ;;  %v3011_v37 = vld [vmem:[%s4274_s4 + $0x8] sm:$0xff]  }
 0x1b4   :  { %2022 = vmatpush1.bf16.msra.mxu1 %v3011_v37 }
 0x1b5   :  { %3089 = vtanh.f32 %v981_v12  ;;  %v3084_v13 = vpop.eup %3083  ;;  %2023 = vmatprep.subr.bf16.mxu1 %v3107_v7 }
 0x1b7   :  { %v3086_v20 = vpop.eup %3085 }
 0x1b8   :  { %v1018_v22 = vpack.c.bf16 %v3086_v20, %v3084_v13  ;;  %2024 = vmatpush1.bf16.msra.mxu1 %v3012_v17 }
 0x1b9   :  { %2025 = vmatprep.subr.bf16.mxu1 %v3107_v7 }
 0x1ba   :  { %2642 = vmatprep.mubr.msk.bf16.mxu1 %vm1068_vm9, %v1018_v22 }
 0x1bc   :  { %2026 = vmatpush1.bf16.msra.mxu1 %v3013_v38 }
 0x1bd   :  { %v3088_v21 = vpop.eup %3087  ;;  %2027 = vmatprep.subr.bf16.mxu1 %v3107_v7 }
 0x1bf   :  { %v3090_v58 = vpop.eup %3089 }
 0x1c0   :  { %v1019_v23 = vpack.c.bf16 %v3090_v58, %v3088_v21  ;;  %2028 = vmatpush1.bf16.msra.mxu1 %v3014_v24 }
 0x1c1   :  { %2029 = vmatprep.subr.bf16.mxu1 %v3107_v7 }
 0x1c2   :  { %2643 = vmatmul.mubr.msk.bf16.gmra.mrb[20].mxu1 %vm1068_vm9, %v1019_v23 }
 0x1c4   :  { %2030 = vmatpush1.bf16.msra.mxu1 %v3015_v19 }
 0x1c5   :  { %2031 = vmatprep.subr.bf16.mxu1 %v3107_v7 }
 0x1c8   :  { %2032 = vmatpush1.bf16.msra.mxu1 %v3016_v31 }
 0x1c9   :  { %2033 = vmatprep.subr.bf16.mxu1 %v3107_v7 }
 0x1cc   :  { %2034 = vmatpush1.bf16.msra.mxu1 %v3017_v32 }
 0x1cd   :  { %2035 = vmatprep.subr.bf16.mxu1 %v3107_v7 }
 0x1d0   :  { %2036 = vmatpush1.bf16.msra.mxu1 %v3018_v36 }
 0x1d1   :  { %2037 = vmatprep.subr.bf16.mxu1 %v3107_v7 }
 0x1d4   :  { %2038 = vmatpush1.bf16.msra.mxu1 %v3019_v34 }
 0x1d5   :  { %2039 = vmatprep.subr.bf16.mxu1 %v3107_v7 }
 0x1d8   :  { %2040 = vmatpush1.bf16.msra.mxu1 %v3020_v1 }
 0x1d9   :  { %2041 = vmatprep.subr.bf16.mxu1 %v3107_v7 }
 0x1dc   :  { %2042 = vmatpush1.bf16.msra.mxu1 %v3021_v9 }
 0x1dd   :  { %2043 = vmatprep.subr.bf16.mxu1 %v3107_v7 }
 0x1e0   :  { %2044 = vmatpush1.bf16.msra.mxu1 %v3022_v57 }
 0x1e1   :  { %2045 = vmatprep.subr.bf16.mxu1 %v3107_v7 }
 0x245   :  { %v2624_v2 = vpop.f32.mrb[0].mxu1 }
 0x246   :  { %v1139_v60 = vpop.f32.mrb[1].mxu1  ;;  %v1261_v27 = vrot.slane %v2624_v2, 1 }
 0x247   :  { %v2625_v25 = vpop.f32.mrb[2].mxu1  ;;  %v1258_v28 = vrot.slane %v1139_v60, 1 }
 0x248   :  { %v1142_v26 = vpop.f32.mrb[3].mxu1  ;;  %v1324_v42 = vadd.f32 %v2624_v2, %v1261_v27  ;;  %v1263_v53 = vrot.slane %v2625_v25, 1 }
 0x249   :  { %v1259_v29 = vrot.slane %v1142_v26, 1 }
 0x24a   :  { %v1482_v11 = vrot.slane %v1324_v42, 1  ;;  %v1498_v18 = vrot.slane %v1324_v42, 2  ;;  %v1514_v10 = vrot.slane %v1324_v42, 3 }
 0x24b   :  { %v1260_v33 = vsel %vm97_vm0, %v1258_v28, %v1259_v29  ;;  %v1262_v30 = vsel %vm97_vm0, %v1259_v29, %v1261_v27 }
 0x24c   :  { %v1322_v40 = vadd.f32 %v1260_v33, %v1139_v60  ;;  %v1323_v35 = vadd.f32 %v1262_v30, %v1142_v26  ;;  %v1589_v0 = vsel %vm1530_vm10, %v1324_v42, %v1482_v11 }
 0x24d   :  { %v1597_v59 = vsel %vm1539_vm11, %v1589_v0, %v1498_v18 }
 0x24e   :  { %v1354_v43 = vrot.slane %v1322_v40, 1  ;;  %v1370_v45 = vrot.slane %v1322_v40, 2  ;;  %v1386_v46 = vrot.slane %v1322_v40, 3  ;;  %v1410_v48 = vrot.slane %v1323_v35, 4 }
 0x24f   :  { %v1426_v49 = vrot.slane %v1323_v35, 5  ;;  %v1442_v50 = vrot.slane %v1323_v35, 6  ;;  %v1458_v39 = vrot.slane %v1323_v35, 7  ;;  %v1605_v20 = vsel %vm1548_vm12, %v1597_v59, %v1514_v10 }
 0x250   :  { %v1531_v47 = vsel %vm1530_vm10, %v1322_v40, %v1354_v43  ;;  %v3858_v19 = vmul.f32 0.5, %v1605_v20 }
 0x251   :  { %v1540_v14 = vsel %vm1539_vm11, %v1531_v47, %v1370_v45 }
 0x252   :  { %v1549_v5 = vsel %vm1548_vm12, %v1540_v14, %v1386_v46 }
 0x253   :  { %v1557_v51 = vsel %vm484_vm3, %v1549_v5, %v1410_v48  ;;  %v1742_v48 = vrot.slane %v3858_v19, 3  ;;  %v1694_v5 = vrot.slane %v3858_v19, 2 }
 0x254   :  { %v1565_v52 = vsel %vm355_vm1, %v1557_v51, %v1426_v49 }
 0x255   :  { %v1573_v54 = vsel %vm226_vm2, %v1565_v52, %v1442_v50  ;;  %v2628_v55 = vpop.f32.mrb[4].mxu1  ;;  %v1790_v50 = vrot.slane %v3858_v19, 4 }
 0x256   :  { %v1581_v61 = vsel %vm97_vm0, %v1573_v54, %v1458_v39  ;;  %v1155_v16 = vpop.f32.mrb[5].mxu1  ;;  %v1268_v63 = vrot.slane %v2628_v55, 1  ;;  %v1646_v54 = vrot.slane %v3858_v19, 1 }
 0x257   :  { %v1264_v41 = vrot.slane %v1155_v16, 1  ;;  %v3839_v62 = vpop.f32.mrb[6].mxu1  ;;  %v3860_v2 = vmul.f32 0.5, %v1581_v61 }
 0x258   :  { %v1269_v56 = vrot.slane %v3839_v62, 1  ;;  %v1158_v3 = vpop.f32.mrb[7].mxu1 }
 0x259   :  { %v1265_v6 = vsel %vm97_vm0, %v1263_v53, %v1264_v41  ;;  %v1266_v15 = vrot.slane %v1158_v3, 1  ;;  %v1741_v46 = vrot.slane %v3860_v2, 3  ;;  %v1693_v14 = vrot.slane %v3860_v2, 2 }
 0x25a   :  { %v1325_v8 = vadd.f32 %v2625_v25, %v1265_v6  ;;  %v1270_v4 = vsel %vm97_vm0, %v1268_v63, %v1269_v56  ;;  %v1789_v52 = vrot.slane %v3860_v2, 4  ;;  %v1645_v18 = vrot.slane %v3860_v2, 1 }
 0x25b   :  { %v1328_v12 = vadd.f32 %v2628_v55, %v1270_v4  ;;  %v1267_v44 = vsel %vm97_vm0, %v1264_v41, %v1266_v15  ;;  %v1327_v13 = vadd.f32 %v1266_v15, %v1158_v3  ;;  %v1743_v0 = vsel %vm355_vm1, %v1741_v46, %v1742_v48 }
 0x25c   :  { %v1355_v22 = vrot.slane %v1325_v8, 1  ;;  %v1371_v21 = vrot.slane %v1325_v8, 2  ;;  %v1326_v58 = vadd.f32 %v1267_v44, %v1155_v16  ;;  %v1387_v37 = vrot.slane %v1325_v8, 3 }
 0x25d   :  { %v1483_v23 = vrot.slane %v1327_v13, 1  ;;  %v1356_v38 = vrot.slane %v1328_v12, 1  ;;  %v1499_v60 = vrot.slane %v1327_v13, 2  ;;  %v1515_v27 = vrot.slane %v1327_v13, 3 }
 0x25e   :  { %v1532_v17 = vsel %vm1530_vm10, %v1325_v8, %v1355_v22  ;;  %v1411_v24 = vrot.slane %v1326_v58, 4  ;;  %v1427_v26 = vrot.slane %v1326_v58, 5  ;;  %v1372_v29 = vrot.slane %v1328_v12, 2  ;;  %v3023_v8 = vld [vmem:[%s4274_s4 + $0x68] sm:$0xff]  }
 0x25f   :  { %v1541_v31 = vsel %vm1539_vm11, %v1532_v17, %v1371_v21  ;;  %v1590_v28 = vsel %vm1530_vm10, %v1327_v13, %v1483_v23  ;;  %v1443_v32 = vrot.slane %v1326_v58, 6  ;;  %v1533_v40 = vsel %vm1530_vm10, %v1328_v12, %v1356_v38  ;;  %2046 = vmatpush1.bf16.msra.mxu1 %v3023_v8 }
 0x260   :  { %v1550_v25 = vsel %vm1548_vm12, %v1541_v31, %v1387_v37  ;;  %v1598_v30 = vsel %vm1539_vm11, %v1590_v28, %v1499_v60  ;;  %v1459_v35 = vrot.slane %v1326_v58, 7  ;;  %v1542_v34 = vsel %vm1539_vm11, %v1533_v40, %v1372_v29  ;;  %2047 = vmatprep.subr.bf16.mxu1 %v3107_v7 }
 0x261   :  { %v1558_v33 = vsel %vm484_vm3, %v1550_v25, %v1411_v24  ;;  %v1606_v42 = vsel %vm1548_vm12, %v1598_v30, %v1515_v27  ;;  %v1388_v51 = vrot.slane %v1328_v12, 3  ;;  %v1695_v59 = vsel %vm226_vm2, %v1693_v14, %v1694_v5 }
 0x262   :  { %v1566_v36 = vsel %vm355_vm1, %v1558_v33, %v1427_v26  ;;  %v3872_v45 = vmul.f32 0.5, %v1606_v42  ;;  %v3024_v33 = vld [vmem:[%s4274_s4 + $0x70] sm:$0xff]   ;;  %s3113_s4 = smov 96  }
 0x263   :  { %v1574_v43 = vsel %vm226_vm2, %v1566_v36, %v1443_v32  ;;  %v1551_v53 = vsel %vm1548_vm12, %v1542_v34, %v1388_v51  ;;  %2048 = vmatpush1.bf16.msra.mxu1 %v3024_v33 }
 0x264   :  { %v1582_v47 = vsel %vm97_vm0, %v1574_v43, %v1459_v35  ;;  %v1745_v16 = vrot.slane %v3872_v45, 3  ;;  %v1697_v10 = vrot.slane %v3872_v45, 2 }
 0x265   :  { %v3879_v11 = vmul.f32 0.5, %v1582_v47  ;;  %v2632_v49 = vpop.f32.mrb[8].mxu1 }
 0x266   :  { %v1171_v39 = vpop.f32.mrb[9].mxu1  ;;  %v1274_v41 = vrot.slane %v2632_v49, 1 }
 0x267   :  { %v1271_v55 = vrot.slane %v1171_v39, 1  ;;  %v2633_v1 = vpop.f32.mrb[10].mxu1  ;;  %v1744_v61 = vrot.slane %v3879_v11, 3  ;;  %v1696_v37 = vrot.slane %v3879_v11, 2  ;;  %v1792_v38 = vrot.slane %v3879_v11, 4 }
 0x268   :  { %v1276_v63 = vrot.slane %v2633_v1, 1  ;;  %v1174_v3 = vpop.f32.mrb[11].mxu1  ;;  %v1648_v24 = vrot.slane %v3879_v11, 1 }
 0x269   :  { %v1272_v6 = vsel %vm97_vm0, %v1269_v56, %v1271_v55  ;;  %v1330_v15 = vadd.f32 %v1271_v55, %v1171_v39  ;;  %v1746_v9 = vsel %vm355_vm1, %v1744_v61, %v1745_v16  ;;  %v1793_v56 = vrot.slane %v3872_v45, 4 }
 0x26a   :  { %v1329_v4 = vadd.f32 %v3839_v62, %v1272_v6  ;;  %v1277_v12 = vsel %vm97_vm0, %v1274_v41, %v1276_v63  ;;  %v1333_v44 = vadd.f32 %v2633_v1, %v1276_v63  ;;  %v2920_v13 = vpack.i.bf16 %v1746_v9, %v1743_v0 }
 0x26b   :  { %v1484_v20 = vrot.slane %v1330_v15, 1  ;;  %v1500_v22 = vrot.slane %v1330_v15, 2  ;;  %v3901_v21 = vadd.f32 %v2632_v49, %v1277_v12  ;;  %v1273_v57 = vrot.slane %v1174_v3, 1 }
 0x26c   :  { %v1412_v58 = vrot.slane %v1329_v4, 4  ;;  %v1428_v23 = vrot.slane %v1329_v4, 5  ;;  %2921 = vrot.lane.b32.xlu1 %v2920_v13, %s3112_s14  ;;  %v1516_v62 = vrot.slane %v1330_v15, 3  ;;  %v1444_v31 = vrot.slane %v1329_v4, 6 }
 0x26d   :  { %v1591_v17 = vsel %vm1530_vm10, %v1330_v15, %v1484_v20  ;;  %v1485_v26 = vrot.slane %v1333_v44, 1  ;;  %v1460_v27 = vrot.slane %v1329_v4, 7  ;;  %v1501_v32 = vrot.slane %v1333_v44, 2 }
 0x26e   :  { %v1559_v60 = vsel %vm484_vm3, %v1551_v53, %v1412_v58  ;;  %v1599_v25 = vsel %vm1539_vm11, %v1591_v17, %v1500_v22  ;;  %v1517_v40 = vrot.slane %v1333_v44, 3  ;;  %v1275_v36 = vsel %vm97_vm0, %v1273_v57, %v1274_v41 }
 0x26f   :  { %v1567_v28 = vsel %vm355_vm1, %v1559_v60, %v1428_v23  ;;  %v1607_v29 = vsel %vm1548_vm12, %v1599_v25, %v1516_v62  ;;  %v1592_v35 = vsel %vm1530_vm10, %v1333_v44, %v1485_v26  ;;  %v1331_v46 = vadd.f32 %v1275_v36, %v1174_v3 }
 0x270   :  { %v1575_v30 = vsel %vm226_vm2, %v1567_v28, %v1444_v31  ;;  %v1600_v43 = vsel %vm1539_vm11, %v1592_v35, %v1501_v32  ;;  %v1698_v47 = vsel %vm226_vm2, %v1696_v37, %v1697_v10  ;;  %v1794_v34 = vsel %vm484_vm3, %v1792_v38, %v1793_v56 }
 0x271   :  { %v1583_v42 = vsel %vm97_vm0, %v1575_v30, %v1460_v27  ;;  %v2915_v14 = vpack.i.bf16 %v1698_v47, %v1695_v59  ;;  %v1649_v49 = vrot.slane %v3872_v45, 1  ;;  %v1608_v5 = vsel %vm1548_vm12, %v1600_v43, %v1517_v40 }
 0x272   :  { %v3923_v48 = vmul.f32 0.5, %v1583_v42  ;;  %v1357_v51 = vrot.slane %v1331_v46, 1  ;;  %v1373_v39 = vrot.slane %v1331_v46, 2  ;;  %v1791_v55 = vsel %vm484_vm3, %v1789_v52, %v1790_v50 }
 0x273   :  { %v3933_v1 = vmul.f32 0.5, %v1607_v29  ;;  %2916 = vrot.lane.b32.xlu0 %v2915_v14, %s3113_s4  ;;  %v2930_v0 = vpack.i.bf16 %v1794_v34, %v1791_v55  ;;  %v1647_v45 = vsel %vm97_vm0, %v1645_v18, %v1646_v54  ;;  %v1650_v61 = vsel %vm97_vm0, %v1648_v24, %v1649_v49 }
 0x274   :  { %v1413_v16 = vrot.slane %v3901_v21, 4  ;;  %v1389_v53 = vrot.slane %v1331_v46, 3  ;;  %v1534_v41 = vsel %vm1530_vm10, %v1331_v46, %v1357_v51  ;;  %v2925_v50 = vpack.i.bf16 %v1650_v61, %v1647_v45 }
 0x275   :  { %v2636_v52 = vpop.f32.mrb[12].mxu1  ;;  %v3944_v63 = vmul.f32 0.5, %v1608_v5  ;;  %v1543_v3 = vsel %vm1539_vm11, %v1534_v41, %v1373_v39  ;;  %2931 = vrot.lane.b32.xlu1 %v2930_v0, %s3114_s17  ;;  %v1747_v18 = vrot.slane %v3923_v48, 3  ;;  %v1429_v54 = vrot.slane %v3901_v21, 5 }
 0x276   :  { %v1281_v19 = vrot.slane %v2636_v52, 1  ;;  %v1187_v59 = vpop.f32.mrb[13].mxu1  ;;  %v1445_v6 = vrot.slane %v3901_v21, 6  ;;  %v1552_v15 = vsel %vm1548_vm12, %v1543_v3, %v1389_v53  ;;  %v1461_v10 = vrot.slane %v3901_v21, 7 }
 0x277   :  { %v3952_v9 = vpop.f32.mrb[14].mxu1  ;;  %v1560_v8 = vsel %vm484_vm3, %v1552_v15, %v1413_v16  ;;  %2926 = vrot.lane.b32.xlu0 %v2925_v50, %s3115_s18  ;;  %v1748_v12 = vrot.slane %v3933_v1, 3  ;;  %v1699_v44 = vrot.slane %v3923_v48, 2  ;;  %v1278_v22 = vrot.slane %v1187_v59, 1 }
 0x278   :  { %v1190_v4 = vpop.f32.mrb[15].mxu1  ;;  %v1568_v13 = vsel %vm355_vm1, %v1560_v8, %v1429_v54  ;;  %v3960_v20 = vadd.f32 %v2636_v52, %v1281_v19  ;;  %v1751_v23 = vrot.slane %v3944_v63, 3  ;;  %v1795_v57 = vrot.slane %v3923_v48, 4 }
 0x279   :  { %v1279_v56 = vrot.slane %v1190_v4, 1  ;;  %v1576_v58 = vsel %vm226_vm2, %v1568_v13, %v1445_v6  ;;  %v1749_v21 = vsel %vm355_vm1, %v1747_v18, %v1748_v12  ;;  %v1700_v38 = vrot.slane %v3933_v1, 2 }
 0x27a   :  { %v1584_v17 = vsel %vm97_vm0, %v1576_v58, %v1461_v10  ;;  %v1796_v25 = vrot.slane %v3933_v1, 4  ;;  %v1486_v26 = vrot.slane %v3960_v20, 1  ;;  %v1703_v28 = vrot.slane %v3944_v63, 2 }
 0x27b   :  { %v1280_v37 = vsel %vm97_vm0, %v1278_v22, %v1279_v56  ;;  %v1282_v62 = vsel %vm97_vm0, %v1279_v56, %v1281_v19  ;;  %v3970_v60 = vmul.f32 0.5, %v1584_v17  ;;  %v1701_v27 = vsel %vm226_vm2, %v1699_v44, %v1700_v38 }
 0x27c   :  { %v1334_v24 = vadd.f32 %v1280_v37, %v1187_v59  ;;  %v1335_v31 = vadd.f32 %v1282_v62, %v1190_v4  ;;  %v1799_v29 = vrot.slane %v3944_v63, 4  ;;  %v1797_v30 = vsel %vm484_vm3, %v1795_v57, %v1796_v25 }
 0x27d   :  { %v1651_v40 = vrot.slane %v3923_v48, 1  ;;  %v1652_v42 = vrot.slane %v3933_v1, 1  ;;  %v1655_v43 = vrot.slane %v3944_v63, 1  ;;  %v1750_v14 = vrot.slane %v3970_v60, 3 }
 0x27e   :  { %v1358_v32 = vrot.slane %v1334_v24, 1  ;;  %v1374_v33 = vrot.slane %v1334_v24, 2  ;;  %v1390_v35 = vrot.slane %v1334_v24, 3  ;;  %v1414_v36 = vrot.slane %v1335_v31, 4 }
 0x27f   :  { %v1430_v46 = vrot.slane %v1335_v31, 5  ;;  %v1702_v34 = vrot.slane %v3970_v60, 2  ;;  %v1446_v49 = vrot.slane %v1335_v31, 6  ;;  %v1798_v51 = vrot.slane %v3970_v60, 4 }
 0x280   :  { %v1535_v47 = vsel %vm1530_vm10, %v1334_v24, %v1358_v32  ;;  %v1654_v39 = vrot.slane %v3970_v60, 1  ;;  %v1462_v55 = vrot.slane %v1335_v31, 7  ;;  %v1752_v1 = vsel %vm355_vm1, %v1750_v14, %v1751_v23 }
 0x281   :  { %v1544_v5 = vsel %vm1539_vm11, %v1535_v47, %v1374_v33  ;;  %v1704_v45 = vsel %vm226_vm2, %v1702_v34, %v1703_v28  ;;  %v2940_v16 = vpack.i.bf16 %v1752_v1, %v1749_v21  ;;  %v1800_v41 = vsel %vm484_vm3, %v1798_v51, %v1799_v29 }
 0x282   :  { %v1553_v0 = vsel %vm1548_vm12, %v1544_v5, %v1390_v35  ;;  %v2935_v53 = vpack.i.bf16 %v1704_v45, %v1701_v27  ;;  %v2950_v52 = vpack.i.bf16 %v1800_v41, %v1797_v30  ;;  %v1653_v63 = vsel %vm97_vm0, %v1651_v40, %v1652_v42 }
 0x283   :  { %v1561_v61 = vsel %vm484_vm3, %v1553_v0, %v1414_v36  ;;  %v1656_v3 = vsel %vm97_vm0, %v1654_v39, %v1655_v43  ;;  %2941 = vrot.lane.b32.xlu1 %v2940_v16, %s3112_s14  ;;  %v1502_v15 = vrot.slane %v3960_v20, 2  ;;  %v1283_v10 = vrot.slane %v3952_v9, 1 }
 0x284   :  { %v1569_v50 = vsel %vm355_vm1, %v1561_v61, %v1430_v46  ;;  %2936 = vrot.lane.b32.xlu0 %v2935_v53, %s3113_s4  ;;  %v2945_v59 = vpack.i.bf16 %v1656_v3, %v1653_v63  ;;  %v1593_v12 = vsel %vm1530_vm10, %v3960_v20, %v1486_v26  ;;  %v1518_v38 = vrot.slane %v3960_v20, 3 }
 0x285   :  { %v1577_v19 = vsel %vm226_vm2, %v1569_v50, %v1446_v49  ;;  %v2640_v18 = vpop.f32.mrb[16].mxu1  ;;  %v1601_v57 = vsel %vm1539_vm11, %v1593_v12, %v1502_v15 }
 0x286   :  { %v1585_v54 = vsel %vm97_vm0, %v1577_v19, %v1462_v55  ;;  %v1203_v6 = vpop.f32.mrb[17].mxu1  ;;  %v1288_v44 = vrot.slane %v2640_v18, 1  ;;  %v1609_v27 = vsel %vm1548_vm12, %v1601_v57, %v1518_v38 }
 0x287   :  { %v1284_v8 = vrot.slane %v1203_v6, 1  ;;  %v4001_v4 = vpop.f32.mrb[18].mxu1  ;;  %2951 = vrot.lane.b32.xlu1 %v2950_v52, %s3114_s17  ;;  %v4018_v32 = vmul.f32 0.5, %v1585_v54  ;;  %v4023_v43 = vmul.f32 0.5, %v1609_v27 }
 0x288   :  { %v1289_v13 = vrot.slane %v4001_v4, 1  ;;  %v1206_v22 = vpop.f32.mrb[19].mxu1  ;;  %2946 = vrot.lane.b32.xlu0 %v2945_v59, %s3115_s18 }
 0x289   :  { %v1285_v56 = vsel %vm97_vm0, %v1283_v10, %v1284_v8  ;;  %v1286_v58 = vrot.slane %v1206_v22, 1  ;;  %v1753_v45 = vrot.slane %v4018_v32, 3  ;;  %v1754_v53 = vrot.slane %v4023_v43, 3 }
 0x28a   :  { %v1337_v21 = vadd.f32 %v3952_v9, %v1285_v56  ;;  %v1290_v23 = vsel %vm97_vm0, %v1288_v44, %v1289_v13  ;;  %v1706_v41 = vrot.slane %v4023_v43, 2  ;;  %v1802_v50 = vrot.slane %v4023_v43, 4 }
 0x28b   :  { %v1340_v37 = vadd.f32 %v2640_v18, %v1290_v23  ;;  %v1287_v62 = vsel %vm97_vm0, %v1284_v8, %v1286_v58  ;;  %v1339_v17 = vadd.f32 %v1286_v58, %v1206_v22  ;;  %v1705_v3 = vrot.slane %v4018_v32, 2 }
 0x28c   :  { %v1359_v24 = vrot.slane %v1337_v21, 1  ;;  %v1375_v31 = vrot.slane %v1337_v21, 2  ;;  %v1338_v25 = vadd.f32 %v1287_v62, %v1203_v6  ;;  %v1391_v28 = vrot.slane %v1337_v21, 3 }
 0x28d   :  { %v1487_v26 = vrot.slane %v1339_v17, 1  ;;  %v1360_v30 = vrot.slane %v1340_v37, 1  ;;  %v1503_v40 = vrot.slane %v1339_v17, 2  ;;  %v1519_v20 = vrot.slane %v1339_v17, 3 }
 0x28e   :  { %v1536_v9 = vsel %vm1530_vm10, %v1337_v21, %v1359_v24  ;;  %v1415_v29 = vrot.slane %v1338_v25, 4  ;;  %v1431_v36 = vrot.slane %v1338_v25, 5  ;;  %v1447_v46 = vrot.slane %v1338_v25, 6 }
 0x28f   :  { %v1545_v33 = vsel %vm1539_vm11, %v1536_v9, %v1375_v31  ;;  %v1594_v42 = vsel %vm1530_vm10, %v1339_v17, %v1487_v26  ;;  %v1376_v34 = vrot.slane %v1340_v37, 2  ;;  %v1463_v49 = vrot.slane %v1338_v25, 7 }
 0x290   :  { %v1554_v35 = vsel %vm1548_vm12, %v1545_v33, %v1391_v28  ;;  %v1602_v14 = vsel %vm1539_vm11, %v1594_v42, %v1503_v40  ;;  %v1537_v39 = vsel %vm1530_vm10, %v1340_v37, %v1360_v30  ;;  %v1801_v19 = vrot.slane %v4018_v32, 4 }
 0x291   :  { %v1562_v47 = vsel %vm484_vm3, %v1554_v35, %v1415_v29  ;;  %v1610_v51 = vsel %vm1548_vm12, %v1602_v14, %v1519_v20  ;;  %v1546_v52 = vsel %vm1539_vm11, %v1537_v39, %v1376_v34  ;;  %v1658_v59 = vrot.slane %v4023_v43, 1 }
 0x292   :  { %v1570_v5 = vsel %vm355_vm1, %v1562_v47, %v1431_v36  ;;  %v4031_v0 = vmul.f32 0.5, %v1610_v51  ;;  %v1392_v18 = vrot.slane %v1340_v37, 3  ;;  %v1755_v22 = vsel %vm355_vm1, %v1753_v45, %v1754_v53 }
 0x293   :  { %v1578_v55 = vsel %vm226_vm2, %v1570_v5, %v1447_v46  ;;  %v1657_v56 = vrot.slane %v4018_v32, 1  ;;  %v1707_v25 = vsel %vm226_vm2, %v1705_v3, %v1706_v41  ;;  %v1803_v26 = vsel %vm484_vm3, %v1801_v19, %v1802_v50 }
 0x294   :  { %v1586_v1 = vsel %vm97_vm0, %v1578_v55, %v1463_v49  ;;  %v1757_v10 = vrot.slane %v4031_v0, 3  ;;  %v1555_v58 = vsel %vm1548_vm12, %v1546_v52, %v1392_v18  ;;  %v1709_v33 = vrot.slane %v4031_v0, 2 }
 0x295   :  { %v4035_v61 = vmul.f32 0.5, %v1586_v1  ;;  %v2644_v16 = vpop.f32.mrb[20].mxu1  ;;  %v1805_v30 = vrot.slane %v4031_v0, 4  ;;  %v1661_v41 = vrot.slane %v4031_v0, 1  ;;  %v1659_v18 = vsel %vm97_vm0, %v1657_v56, %v1658_v59 }
 0x296   :  { %v1219_v63 = vpop.f32.mrb[21].mxu1  ;;  %v1294_v8 = vrot.slane %v2644_v16, 1 }
 0x297   :  { %v1291_v54 = vrot.slane %v1219_v63, 1  ;;  %v2645_v6 = vpop.f32.mrb[22].mxu1  ;;  %v1756_v15 = vrot.slane %v4035_v61, 3  ;;  %v1804_v20 = vrot.slane %v4035_v61, 4  ;;  %v1660_v47 = vrot.slane %v4035_v61, 1 }
 0x298   :  { %v1296_v12 = vrot.slane %v2645_v6, 1  ;;  %v1222_v44 = vpop.f32.mrb[23].mxu1 }
 0x299   :  { %v1292_v21 = vsel %vm97_vm0, %v1289_v13, %v1291_v54  ;;  %v1342_v23 = vadd.f32 %v1291_v54, %v1219_v63  ;;  %v1758_v57 = vsel %vm355_vm1, %v1756_v15, %v1757_v10  ;;  %v1293_v29 = vrot.slane %v1222_v44, 1 }
 0x29a   :  { %v1341_v37 = vadd.f32 %v4001_v4, %v1292_v21  ;;  %v1297_v62 = vsel %vm97_vm0, %v1294_v8, %v1296_v12  ;;  %v1345_v17 = vadd.f32 %v2645_v6, %v1296_v12  ;;  %v2960_v38 = vpack.i.bf16 %v1758_v57, %v1755_v22 }
 0x29b   :  { %v1488_v24 = vrot.slane %v1342_v23, 1  ;;  %v1344_v31 = vadd.f32 %v2644_v16, %v1297_v62  ;;  %v1504_v9 = vrot.slane %v1342_v23, 2  ;;  %v1708_v4 = vrot.slane %v4035_v61, 2 }
 0x29c   :  { %v1416_v27 = vrot.slane %v1341_v37, 4  ;;  %v1432_v28 = vrot.slane %v1341_v37, 5  ;;  %2961 = vrot.lane.b32.xlu1 %v2960_v38, %s3112_s14  ;;  %v1448_v40 = vrot.slane %v1341_v37, 6  ;;  %v1489_v36 = vrot.slane %v1345_v17, 1 }
 0x29d   :  { %v1595_v13 = vsel %vm1530_vm10, %v1342_v23, %v1488_v24  ;;  %v1464_v42 = vrot.slane %v1341_v37, 7  ;;  %v1505_v46 = vrot.slane %v1345_v17, 2  ;;  %v1295_v5 = vsel %vm97_vm0, %v1293_v29, %v1294_v8 }
 0x29e   :  { %v1563_v35 = vsel %vm484_vm3, %v1555_v58, %v1416_v27  ;;  %v1603_v34 = vsel %vm1539_vm11, %v1595_v13, %v1504_v9  ;;  %v1596_v49 = vsel %vm1530_vm10, %v1345_v17, %v1489_v36  ;;  %v1520_v51 = vrot.slane %v1342_v23, 3 }
 0x29f   :  { %v1571_v43 = vsel %vm355_vm1, %v1563_v35, %v1432_v28  ;;  %v1343_v55 = vadd.f32 %v1295_v5, %v1222_v44  ;;  %v1710_v1 = vsel %vm226_vm2, %v1708_v4, %v1709_v33  ;;  %v1604_v45 = vsel %vm1539_vm11, %v1596_v49, %v1505_v46 }
 0x2a0   :  { %v1579_v14 = vsel %vm226_vm2, %v1571_v43, %v1448_v40  ;;  %v2955_v16 = vpack.i.bf16 %v1710_v1, %v1707_v25  ;;  %v1806_v53 = vsel %vm484_vm3, %v1804_v20, %v1805_v30  ;;  %v1611_v50 = vsel %vm1548_vm12, %v1603_v34, %v1520_v51 }
 0x2a1   :  { %v1587_v39 = vsel %vm97_vm0, %v1579_v14, %v1464_v42  ;;  %v1521_v52 = vrot.slane %v1345_v17, 3  ;;  %v1361_v63 = vrot.slane %v1343_v55, 1  ;;  %v1377_v3 = vrot.slane %v1343_v55, 2 }
 0x2a2   :  { %2956 = vrot.lane.b32.xlu0 %v2955_v16, %s3113_s4  ;;  %v2970_v19 = vpack.i.bf16 %v1806_v53, %v1803_v26  ;;  %v1662_v54 = vsel %vm97_vm0, %v1660_v47, %v1661_v41  ;;  %v1393_v15 = vrot.slane %v1343_v55, 3  ;;  %v4081_v12 = vmul.f32 0.5, %v1587_v39 }
 0x2a3   :  { %v1612_v6 = vsel %vm1548_vm12, %v1604_v45, %v1521_v52  ;;  %v1538_v10 = vsel %vm1530_vm10, %v1343_v55, %v1361_v63  ;;  %v2965_v8 = vpack.i.bf16 %v1662_v54, %v1659_v18  ;;  %v1626_v0 = vmul.f32 0.5, %v1611_v50 }
 0x2a4   :  { %v1417_v44 = vrot.slane %v1344_v31, 4  ;;  %v1547_v22 = vsel %vm1539_vm11, %v1538_v10, %v1377_v3  ;;  %2971 = vrot.lane.b32.xlu1 %v2970_v19, %s3114_s17  ;;  %v1433_v58 = vrot.slane %v1344_v31, 5  ;;  %v1449_v59 = vrot.slane %v1344_v31, 6 }
 0x2a5   :  { %v1556_v21 = vsel %vm1548_vm12, %v1547_v22, %v1393_v15  ;;  %v1628_v56 = vmul.f32 0.5, %v1612_v6  ;;  %v1465_v57 = vrot.slane %v1344_v31, 7  ;;  %v1759_v17 = vrot.slane %v4081_v12, 3 }
 0x2a6   :  { %v1564_v23 = vsel %vm484_vm3, %v1556_v21, %v1417_v44  ;;  %2966 = vrot.lane.b32.xlu0 %v2965_v8, %s3115_s18  ;;  %v1760_v38 = vrot.slane %v1626_v0, 3  ;;  %v1711_v25 = vrot.slane %v4081_v12, 2  ;;  %v1807_v26 = vrot.slane %v4081_v12, 4 }
 0x2a7   :  { %v1572_v37 = vsel %vm355_vm1, %v1564_v23, %v1433_v58  ;;  %v1663_v27 = vrot.slane %v4081_v12, 1  ;;  %v1763_v9 = vrot.slane %v1628_v56, 3  ;;  %v1712_v29 = vrot.slane %v1626_v0, 2 }
 0x2a8   :  { %v1580_v62 = vsel %vm226_vm2, %v1572_v37, %v1449_v59  ;;  %v1715_v31 = vrot.slane %v1628_v56, 2  ;;  %v1808_v13 = vrot.slane %v1626_v0, 4  ;;  %v1811_v4 = vrot.slane %v1628_v56, 4 }
 0x2a9   :  { %v1588_v24 = vsel %vm97_vm0, %v1580_v62, %v1465_v57  ;;  %v1664_v33 = vrot.slane %v1626_v0, 1  ;;  %v1667_v30 = vrot.slane %v1628_v56, 1  ;;  %v1761_v42 = vsel %vm355_vm1, %v1759_v17, %v1760_v38 }
 0x2aa   :  { %v4095_v28 = vmul.f32 0.5, %v1588_v24  ;;  %v1713_v43 = vsel %vm226_vm2, %v1711_v25, %v1712_v29  ;;  %v1809_v46 = vsel %vm484_vm3, %v1807_v26, %v1808_v13 }
 0x2ab   :  { %v1665_v47 = vsel %vm97_vm0, %v1663_v27, %v1664_v33 }
 0x2ac   :  { %v1762_v40 = vrot.slane %v4095_v28, 3  ;;  %v1714_v35 = vrot.slane %v4095_v28, 2  ;;  %v1810_v36 = vrot.slane %v4095_v28, 4  ;;  %v1666_v20 = vrot.slane %v4095_v28, 1 }
 0x2ae   :  { %v1764_v14 = vsel %vm355_vm1, %v1762_v40, %v1763_v9  ;;  %v1716_v34 = vsel %vm226_vm2, %v1714_v35, %v1715_v31  ;;  %v1812_v49 = vsel %vm484_vm3, %v1810_v36, %v1811_v4  ;;  %v1668_v5 = vsel %vm97_vm0, %v1666_v20, %v1667_v30 }
 0x2af   :  { %v2980_v51 = vpack.i.bf16 %v1764_v14, %v1761_v42  ;;  %v2975_v39 = vpack.i.bf16 %v1716_v34, %v1713_v43  ;;  %v2990_v55 = vpack.i.bf16 %v1812_v49, %v1809_v46  ;;  %v2985_v1 = vpack.i.bf16 %v1668_v5, %v1665_v47 }
 0x2b0   :  { %vm2270_vm0 = vcmask 1041409   ;;  %vm2273_vm1 = vcmask 1042434   ;;  %vm2276_vm2 = vcmask 1043459   ;;  %vm2279_vm3 = vcmask 1044484  }
 0x2b1   :  { %2981 = vrot.lane.b32.xlu1 %v2980_v51, %s3112_s14  ;;  %2976 = vrot.lane.b32.xlu0 %v2975_v39, %s3113_s4 }
 0x2b5   :  { %2991 = vrot.lane.b32.xlu1 %v2990_v55, %s3114_s17  ;;  %2986 = vrot.lane.b32.xlu0 %v2985_v1, %s3115_s18 }
 0x2de   :  { %v2922_v45 = vpop.permute.xlu1 %2921 }
 0x2df   :  { %v2924_v16 = vunpack.i.h.bf16 %v2922_v45  ;;  %v2923_v53 = vunpack.i.l.bf16 %v2922_v45 }
 0x2e5   :  { %v2917_v41 = vpop.permute.xlu0 %2916 }
 0x2e6   :  { %v2919_v50 = vunpack.i.h.bf16 %v2917_v41  ;;  %v2918_v52 = vunpack.i.l.bf16 %v2917_v41 }
 0x2e7   :  { %v2932_v63 = vpop.permute.xlu1 %2931 }
 0x2e8   :  { %v2934_v3 = vunpack.i.h.bf16 %v2932_v63  ;;  %v2933_v19 = vunpack.i.l.bf16 %v2932_v63  ;;  %v1856_v18 = vsel %vm1854_vm13, %v2919_v50, %v2924_v16  ;;  %v1855_v54 = vsel %vm1854_vm13, %v2918_v52, %v2923_v53 }
 0x2e9   :  { %v2927_v6 = vpop.permute.xlu0 %2926 }
 0x2ea   :  { %v1864_v15 = vsel %vm1863_vm14, %v1855_v54, %v2933_v19  ;;  %v1865_v10 = vsel %vm1863_vm14, %v1856_v18, %v2934_v3  ;;  %v2929_v8 = vunpack.i.h.bf16 %v2927_v6  ;;  %v2928_v0 = vunpack.i.l.bf16 %v2927_v6 }
 0x2eb   :  { %v1873_v44 = vpack.c.bf16 %v1865_v10, %v1864_v15 }
 0x2ec   :  { %v1839_v22 = vsel %vm1837_vm15, %v3879_v11, %v2929_v8  ;;  %v1838_v58 = vsel %vm1837_vm15, %v3860_v2, %v2928_v0 }
 0x2ed   :  { %v1847_v21 = vsel %vm1068_vm9, %v1839_v22, %v2919_v50  ;;  %v1846_v59 = vsel %vm1068_vm9, %v1838_v58, %v2918_v52  ;;  %2554 = vmatprep.mubr.msk.bf16.mxu1 %vm688_vm7, %v1873_v44 }
 0x2ee   :  { %v1872_v56 = vpack.c.bf16 %v1847_v21, %v1846_v59 }
 0x2f0   :  { %2052 = vmatmul.mubr.bf16.vlgmr.msra.gmra.mrb[24].mxu1 %v1872_v56 }
 0x2f5   :  { %v2942_v23 = vpop.permute.xlu1 %2941 }
 0x2f6   :  { %v2937_v57 = vpop.permute.xlu0 %2936  ;;  %v2944_v37 = vunpack.i.h.bf16 %v2942_v23  ;;  %v2943_v62 = vunpack.i.l.bf16 %v2942_v23 }
 0x2f7   :  { %v2939_v17 = vunpack.i.h.bf16 %v2937_v57  ;;  %v2938_v38 = vunpack.i.l.bf16 %v2937_v57 }
 0x2f9   :  { %v2952_v24 = vpop.permute.xlu1 %2951  ;;  %v1858_v9 = vsel %vm1854_vm13, %v2939_v17, %v2944_v37  ;;  %v1857_v29 = vsel %vm1854_vm13, %v2938_v38, %v2943_v62 }
 0x2fa   :  { %v2947_v25 = vpop.permute.xlu0 %2946  ;;  %v2954_v11 = vunpack.i.h.bf16 %v2952_v24  ;;  %v2953_v26 = vunpack.i.l.bf16 %v2952_v24  ;;  %v3028_v24 = vld [vmem:[%s4275_s6 + $0x18] sm:$0xff]  }
 0x2fb   :  { %v2949_v27 = vunpack.i.h.bf16 %v2947_v25  ;;  %v2948_v2 = vunpack.i.l.bf16 %v2947_v25  ;;  %v3029_v25 = vld [vmem:[%s4275_s6 + $0x20] sm:$0xff]  }
 0x2fc   :  { %v1866_v31 = vsel %vm1863_vm14, %v1857_v29, %v2953_v26  ;;  %v1867_v13 = vsel %vm1863_vm14, %v1858_v9, %v2954_v11  ;;  %v3030_v11 = vld [vmem:[%s4275_s6 + $0x28] sm:$0xff]   ;;  %v2538_v26 = vld [vmem:[%s4276_s5] ss:$0 sm:$0xff] }
 0x2fd   :  { %v1841_v4 = vsel %vm1837_vm15, %v3970_v60, %v2949_v27  ;;  %v1840_v33 = vsel %vm1837_vm15, %v3923_v48, %v2948_v2  ;;  %v1875_v30 = vpack.c.bf16 %v1867_v13, %v1866_v31 }
 0x2fe   :  { %v1848_v40 = vsel %vm1068_vm9, %v1840_v33, %v2938_v38  ;;  %v1849_v35 = vsel %vm1068_vm9, %v1841_v4, %v2939_v17  ;;  %v3025_v38 = vld [vmem:[%s4275_s6] sm:$0xff]  }
 0x2ff   :  { %v1874_v36 = vpack.c.bf16 %v1849_v35, %v1848_v40  ;;  %2555 = vmatprep.mubr.msk.bf16.mxu1 %vm688_vm7, %v1875_v30  ;;  %2646 = vmatprep.subr.bf16.mxu1 %v3025_v38 }
 0x300   :  { %2647 = vmatpush3.bf16.msra.mxu1 %v3025_v38 }
 0x301   :  { %2060 = vmatmul.mubr.bf16.gmra.mrb[28].mxu1 %v1874_v36 }
 0x30e   :  { %v2962_v20 = vpop.permute.xlu1 %2961 }
 0x30f   :  { %v2964_v42 = vunpack.i.h.bf16 %v2962_v20  ;;  %v2963_v43 = vunpack.i.l.bf16 %v2962_v20 }
 0x314   :  { %v2957_v46 = vpop.permute.xlu0 %2956 }
 0x315   :  { %v2959_v47 = vunpack.i.h.bf16 %v2957_v46  ;;  %v2958_v14 = vunpack.i.l.bf16 %v2957_v46 }
 0x316   :  { %v2972_v34 = vpop.permute.xlu1 %2971 }
 0x317   :  { %v2974_v60 = vunpack.i.h.bf16 %v2972_v34  ;;  %v2973_v49 = vunpack.i.l.bf16 %v2972_v34  ;;  %v1860_v48 = vsel %vm1854_vm13, %v2959_v47, %v2964_v42  ;;  %v1859_v5 = vsel %vm1854_vm13, %v2958_v14, %v2963_v43 }
 0x318   :  { %v2967_v51 = vpop.permute.xlu0 %2966 }
 0x319   :  { %v1868_v39 = vsel %vm1863_vm14, %v1859_v5, %v2973_v49  ;;  %v1869_v55 = vsel %vm1863_vm14, %v1860_v48, %v2974_v60  ;;  %v2969_v1 = vunpack.i.h.bf16 %v2967_v51  ;;  %v2968_v45 = vunpack.i.l.bf16 %v2967_v51 }
 0x31a   :  { %v1877_v16 = vpack.c.bf16 %v1869_v55, %v1868_v39 }
 0x31b   :  { %v1843_v53 = vsel %vm1837_vm15, %v4035_v61, %v2969_v1  ;;  %v1842_v41 = vsel %vm1837_vm15, %v4018_v32, %v2968_v45 }
 0x31c   :  { %2556 = vmatprep.mubr.msk.bf16.mxu1 %vm688_vm7, %v1877_v16  ;;  %v1850_v50 = vsel %vm1068_vm9, %v1842_v41, %v2958_v14  ;;  %v1851_v52 = vsel %vm1068_vm9, %v1843_v53, %v2959_v47 }
 0x31d   :  { %v1876_v63 = vpack.c.bf16 %v1851_v52, %v1850_v50 }
 0x31f   :  { %2068 = vmatmul.mubr.bf16.gmra.mrb[32].mxu1 %v1876_v63 }
 0x323   :  { %v2982_v3 = vpop.permute.xlu1 %2981  ;;  %v2977_v19 = vpop.permute.xlu0 %2976 }
 0x324   :  { %v2984_v18 = vunpack.i.h.bf16 %v2982_v3  ;;  %v2983_v54 = vunpack.i.l.bf16 %v2982_v3  ;;  %v2979_v6 = vunpack.i.h.bf16 %v2977_v19  ;;  %v2978_v15 = vunpack.i.l.bf16 %v2977_v19 }
 0x326   :  { %v1862_v22 = vsel %vm1854_vm13, %v2979_v6, %v2984_v18  ;;  %v1861_v58 = vsel %vm1854_vm13, %v2978_v15, %v2983_v54  ;;  %v3031_v18 = vld [vmem:[%s4277_s7] sm:$0xff]   ;;  %v3032_v54 = vld [vmem:[%s4277_s7 + $0x8] sm:$0xff]  }
 0x327   :  { %v2992_v10 = vpop.permute.xlu1 %2991  ;;  %v2987_v8 = vpop.permute.xlu0 %2986  ;;  %2454 = vmatpush1.bf16.msra.mxu0 %v3031_v18 }
 0x328   :  { %v2994_v61 = vunpack.i.h.bf16 %v2992_v10  ;;  %v2993_v0 = vunpack.i.l.bf16 %v2992_v10  ;;  %v2989_v44 = vunpack.i.h.bf16 %v2987_v8  ;;  %v2988_v32 = vunpack.i.l.bf16 %v2987_v8  ;;  %2455 = vmatprep.subr.bf16.mxu0 %v3107_v7  ;;  %v3035_v10 = vld [vmem:[%s4277_s7 + $0x20] sm:$0xff]   ;;  %v3036_v8 = vld [vmem:[%s4277_s7 + $0x28] sm:$0xff]  }
 0x32a   :  { %v1870_v21 = vsel %vm1863_vm14, %v1861_v58, %v2993_v0  ;;  %v1871_v59 = vsel %vm1863_vm14, %v1862_v22, %v2994_v61  ;;  %v1845_v56 = vsel %vm1837_vm15, %v4095_v28, %v2989_v44  ;;  %v1844_v23 = vsel %vm1837_vm15, %v4081_v12, %v2988_v32  ;;  %v3026_v28 = vld [vmem:[%s4275_s6 + $0x8] sm:$0xff]   ;;  %v3027_v12 = vld [vmem:[%s4275_s6 + $0x10] sm:$0xff]   ;;  %v3038_v0 = vld [vmem:[%s4277_s7 + $0x38] sm:$0xff]  }
 0x32b   :  { %v1879_v57 = vpack.c.bf16 %v1871_v59, %v1870_v21  ;;  %v1852_v37 = vsel %vm1068_vm9, %v1844_v23, %v2978_v15  ;;  %v1853_v62 = vsel %vm1068_vm9, %v1845_v56, %v2979_v6  ;;  %2648 = vmatprep.subr.bf16.mxu1 %v3026_v28  ;;  %2456 = vmatpush1.bf16.msra.mxu0 %v3032_v54  ;;  %v3033_v6 = vld [vmem:[%s4277_s7 + $0x10] sm:$0xff]   ;;  %v3034_v15 = vld [vmem:[%s4277_s7 + $0x18] sm:$0xff]   ;;  %v3039_v44 = vld [vmem:[%s4277_s7 + $0x40] sm:$0xff]  }
 0x32c   :  { %v1878_v17 = vpack.c.bf16 %v1853_v62, %v1852_v37  ;;  %2649 = vmatpush3.bf16.msra.mxu1 %v3026_v28  ;;  %2457 = vmatprep.subr.bf16.mxu0 %v3107_v7  ;;  %v3037_v61 = vld [vmem:[%s4277_s7 + $0x30] sm:$0xff]   ;;  %v3040_v32 = vld [vmem:[%s4277_s7 + $0x48] sm:$0xff]  }
 0x32d   :  { %2557 = vmatprep.mubr.msk.bf16.mxu1 %vm688_vm7, %v1879_v57  ;;  %2650 = vmatprep.subr.bf16.mxu1 %v3027_v12  ;;  %v3041_v22 = vld [vmem:[%s4277_s7 + $0x50] sm:$0xff]  }
 0x32e   :  { %2076 = vmatmul.mubr.bf16.gmra.mrb[36].mxu1 %v1878_v17 }
 0x32f   :  { %2458 = vmatpush1.bf16.msra.mxu0 %v3033_v6 }
 0x330   :  { %2651 = vmatpush3.bf16.msra.mxu1 %v3027_v12  ;;  %2459 = vmatprep.subr.bf16.mxu0 %v3107_v7 }
 0x331   :  { %2652 = vmatprep.subr.bf16.mxu1 %v3028_v24 }
 0x333   :  { %2460 = vmatpush1.bf16.msra.mxu0 %v3034_v15 }
 0x334   :  { %2653 = vmatpush3.bf16.msra.mxu1 %v3028_v24  ;;  %2461 = vmatprep.subr.bf16.mxu0 %v3107_v7 }
 0x335   :  { %2654 = vmatprep.subr.bf16.mxu1 %v3029_v25 }
 0x337   :  { %2462 = vmatpush1.bf16.msra.mxu0 %v3035_v10 }
 0x338   :  { %2655 = vmatpush3.bf16.msra.mxu1 %v3029_v25  ;;  %2463 = vmatprep.subr.bf16.mxu0 %v3107_v7 }
 0x339   :  { %2656 = vmatprep.subr.bf16.mxu1 %v3030_v11 }
 0x33b   :  { %2464 = vmatpush1.bf16.msra.mxu0 %v3036_v8 }
 0x33c   :  { %2657 = vmatpush3.bf16.msra.mxu1 %v3030_v11  ;;  %2465 = vmatprep.subr.bf16.mxu0 %v3107_v7 }
 0x33f   :  { %2466 = vmatpush1.bf16.msra.mxu0 %v3037_v61 }
 0x340   :  { %2467 = vmatprep.subr.bf16.mxu0 %v3107_v7 }
 0x343   :  { %2468 = vmatpush1.bf16.msra.mxu0 %v3038_v0 }
 0x344   :  { %2469 = vmatprep.subr.bf16.mxu0 %v3107_v7 }
 0x347   :  { %2470 = vmatpush1.bf16.msra.mxu0 %v3039_v44 }
 0x348   :  { %2471 = vmatprep.subr.bf16.mxu0 %v3107_v7 }
 0x34b   :  { %2472 = vmatpush1.bf16.msra.mxu0 %v3040_v32 }
 0x34c   :  { %2473 = vmatprep.subr.bf16.mxu0 %v3107_v7 }
 0x34f   :  { %2474 = vmatpush1.bf16.msra.mxu0 %v3041_v22 }
 0x350   :  { %2475 = vmatprep.subr.bf16.mxu0 %v3107_v7 }
 0x3c3   :  { %v2053_v27 = vpop.f32.mrb[24].mxu1 }
 0x3c4   :  { %v2054_v2 = vadd.f32 %v2538_v26, %v2053_v27  ;;  %v2055_v9 = vpop.f32.mrb[25].mxu1 }
 0x3c5   :  { %v2056_v29 = vpop.f32.mrb[26].mxu1 }
 0x3c6   :  { %v2057_v31 = vadd.f32 %v2538_v26, %v2056_v29  ;;  %v2058_v13 = vpop.f32.mrb[27].mxu1  ;;  %3091 = vtanh.f32 %v2054_v2 }
 0x3c8   :  { %3093 = vtanh.f32 %v2057_v31 }
 0x3d0   :  { %v3092_v4 = vpop.eup %3091 }
 0x3d2   :  { %v3094_v33 = vpop.eup %3093 }
 0x3d3   :  { %v2092_v30 = vpack.c.bf16 %v3094_v33, %v3092_v4 }
 0x3d4   :  { %v2061_v40 = vpop.f32.mrb[28].mxu1 }
 0x3d5   :  { %v2062_v35 = vadd.f32 %v2538_v26, %v2061_v40  ;;  %2658 = vmatprep.mubr.msk.bf16.mxu1 %vm1068_vm9, %v2092_v30  ;;  %v2063_v36 = vpop.f32.mrb[29].mxu1 }
 0x3d6   :  { %v2064_v20 = vpop.f32.mrb[30].mxu1 }
 0x3d7   :  { %v2065_v42 = vadd.f32 %v2538_v26, %v2064_v20  ;;  %v2066_v43 = vpop.f32.mrb[31].mxu1  ;;  %3095 = vtanh.f32 %v2062_v35 }
 0x3d9   :  { %3097 = vtanh.f32 %v2065_v42 }
 0x3e1   :  { %v3096_v46 = vpop.eup %3095 }
 0x3e3   :  { %v3098_v47 = vpop.eup %3097 }
 0x3e4   :  { %v2093_v14 = vpack.c.bf16 %v3098_v47, %v3096_v46 }
 0x3e6   :  { %2659 = vmatmul.mubr.msk.bf16.vlgmr.msra.gmra.mrb[40].mxu1 %vm1068_vm9, %v2093_v14 }
 0x3f2   :  { %v2069_v34 = vpop.f32.mrb[32].mxu1 }
 0x3f3   :  { %v2070_v60 = vadd.f32 %v2538_v26, %v2069_v34  ;;  %v2071_v49 = vpop.f32.mrb[33].mxu1 }
 0x3f4   :  { %v2072_v48 = vpop.f32.mrb[34].mxu1 }
 0x3f5   :  { %v2073_v5 = vadd.f32 %v2538_v26, %v2072_v48  ;;  %v2074_v51 = vpop.f32.mrb[35].mxu1  ;;  %3099 = vtanh.f32 %v2070_v60 }
 0x3f7   :  { %3101 = vtanh.f32 %v2073_v5 }
 0x3ff   :  { %v3100_v39 = vpop.eup %3099 }
 0x401   :  { %v3102_v55 = vpop.eup %3101  ;;  %v2077_v1 = vpop.f32.mrb[36].mxu1 }
 0x402   :  { %v2078_v45 = vadd.f32 %v2538_v26, %v2077_v1  ;;  %v2094_v16 = vpack.c.bf16 %v3102_v55, %v3100_v39  ;;  %v2079_v53 = vpop.f32.mrb[37].mxu1 }
 0x403   :  { %v2080_v41 = vpop.f32.mrb[38].mxu1 }
 0x404   :  { %2662 = vmatprep.mubr.msk.bf16.mxu1 %vm1068_vm9, %v2094_v16  ;;  %v2081_v50 = vadd.f32 %v2538_v26, %v2080_v41  ;;  %v2082_v52 = vpop.f32.mrb[39].mxu1  ;;  %3103 = vtanh.f32 %v2078_v45 }
 0x406   :  { %3105 = vtanh.f32 %v2081_v50 }
 0x40e   :  { %v3104_v63 = vpop.eup %3103 }
 0x410   :  { %v3106_v3 = vpop.eup %3105 }
 0x411   :  { %v2095_v19 = vpack.c.bf16 %v3106_v3, %v3104_v63 }
 0x413   :  { %2663 = vmatmul.mubr.msk.bf16.gmra.mrb[44].mxu1 %vm1068_vm9, %v2095_v19  ;;  %v3042_v19 = vld [vmem:[%s4277_s7 + $0x58] sm:$0xff]  }
 0x414   :  { %2476 = vmatpush1.bf16.msra.mxu0 %v3042_v19 }
 0x4b9   :  { %v2660_v58 = vpop.f32.mrb[40].mxu1 }
 0x4ba   :  { %v2231_v21 = vrot.slane %v2660_v58, 1  ;;  %v2190_v59 = vpop.f32.mrb[41].mxu1 }
 0x4bb   :  { %v2229_v56 = vrot.slane %v2190_v59, 1  ;;  %v2661_v23 = vpop.f32.mrb[42].mxu1 }
 0x4bc   :  { %v2247_v57 = vadd.f32 %v2660_v58, %v2231_v21  ;;  %v2232_v37 = vrot.slane %v2661_v23, 1  ;;  %v2193_v62 = vpop.f32.mrb[43].mxu1 }
 0x4bd   :  { %v2245_v17 = vadd.f32 %v2229_v56, %v2190_v59  ;;  %v2230_v38 = vrot.slane %v2193_v62, 1 }
 0x4be   :  { %v2255_v28 = vmul.f32 0.5, %v2247_v57  ;;  %v2248_v12 = vadd.f32 %v2661_v23, %v2232_v37 }
 0x4bf   :  { %v2253_v24 = vmul.f32 0.5, %v2245_v17  ;;  %v2246_v25 = vadd.f32 %v2230_v38, %v2193_v62 }
 0x4c0   :  { %v2256_v11 = vmul.f32 0.5, %v2248_v12  ;;  %v2272_v26 = vrot.slane %v2255_v28, 6  ;;  %v2311_v27 = vrot.slane %v2255_v28, 2  ;;  %v2328_v2 = vrot.slane %v2255_v28, 4 }
 0x4c1   :  { %v2254_v7 = vmul.f32 0.5, %v2246_v25  ;;  %v2291_v9 = vrot.slane %v2253_v24, 2  ;;  %v2308_v29 = vrot.slane %v2253_v24, 4  ;;  %v2325_v31 = vrot.slane %v2253_v24, 6 }
 0x4c2   :  { %v2275_v40 = vrot.slane %v2256_v11, 5  ;;  %v2295_v35 = vrot.slane %v2256_v11, 7  ;;  %v2313_v36 = vrot.slane %v2256_v11, 1  ;;  %v2330_v20 = vrot.slane %v2256_v11, 3 }
 0x4c3   :  { %v2269_v13 = vrot.slane %v2254_v7, 7  ;;  %v2292_v4 = vrot.slane %v2254_v7, 1  ;;  %v2309_v33 = vrot.slane %v2254_v7, 3  ;;  %v2326_v30 = vrot.slane %v2254_v7, 5 }
 0x4c5   :  { %v2271_v42 = vsel %vm2270_vm0, %v2269_v13, %v2253_v24  ;;  %v2293_v43 = vsel %vm2270_vm0, %v2292_v4, %v2291_v9  ;;  %v2310_v46 = vsel %vm2270_vm0, %v2309_v33, %v2308_v29  ;;  %v2327_v47 = vsel %vm2270_vm0, %v2326_v30, %v2325_v31 }
 0x4c6   :  { %v2312_v14 = vsel %vm2273_vm1, %v2311_v27, %v2310_v46  ;;  %v2294_v34 = vsel %vm2273_vm1, %v2255_v28, %v2293_v43  ;;  %v2329_v60 = vsel %vm2273_vm1, %v2328_v2, %v2327_v47  ;;  %v2274_v49 = vsel %vm2273_vm1, %v2272_v26, %v2271_v42  ;;  %v2568_v47 = vld [vmem:[%s4278_s8] ss:$0 sm:$0xff] }
 0x4c7   :  { %v2314_v48 = vsel %vm2276_vm2, %v2313_v36, %v2312_v14  ;;  %v2296_v5 = vsel %vm2276_vm2, %v2295_v35, %v2294_v34  ;;  %v2331_v51 = vsel %vm2276_vm2, %v2330_v20, %v2329_v60  ;;  %v2277_v39 = vsel %vm2276_vm2, %v2275_v40, %v2274_v49 }
 0x4e6   :  { %v2664_v55 = vpop.f32.mrb[44].mxu1 }
 0x4e7   :  { %v2235_v1 = vrot.slane %v2664_v55, 1  ;;  %v2206_v45 = vpop.f32.mrb[45].mxu1 }
 0x4e8   :  { %v2233_v16 = vrot.slane %v2206_v45, 1  ;;  %v2665_v53 = vpop.f32.mrb[46].mxu1 }
 0x4e9   :  { %v2251_v41 = vadd.f32 %v2664_v55, %v2235_v1  ;;  %v2236_v50 = vrot.slane %v2665_v53, 1  ;;  %v2209_v52 = vpop.f32.mrb[47].mxu1 }
 0x4ea   :  { %v2249_v63 = vadd.f32 %v2233_v16, %v2206_v45  ;;  %v2234_v3 = vrot.slane %v2209_v52, 1 }
 0x4eb   :  { %v2259_v18 = vmul.f32 0.5, %v2251_v41  ;;  %v2252_v54 = vadd.f32 %v2665_v53, %v2236_v50 }
 0x4ec   :  { %v2257_v6 = vmul.f32 0.5, %v2249_v63  ;;  %v2250_v15 = vadd.f32 %v2234_v3, %v2209_v52 }
 0x4ed   :  { %v2284_v10 = vrot.slane %v2259_v18, 2  ;;  %v2260_v8 = vmul.f32 0.5, %v2252_v54  ;;  %v2318_v61 = vrot.slane %v2259_v18, 6  ;;  %v2301_v0 = vrot.slane %v2259_v18, 4 }
 0x4ee   :  { %v2278_v44 = vrot.slane %v2257_v6, 4  ;;  %v2297_v32 = vrot.slane %v2257_v6, 6  ;;  %v2332_v22 = vrot.slane %v2257_v6, 2  ;;  %v2258_v58 = vmul.f32 0.5, %v2250_v15 }
 0x4ef   :  { %v2315_v21 = vsel %vm2279_vm3, %v2257_v6, %v2314_v48  ;;  %v2320_v59 = vrot.slane %v2260_v8, 5  ;;  %v2303_v56 = vrot.slane %v2260_v8, 3  ;;  %v2337_v23 = vrot.slane %v2260_v8, 7 }
 0x4f0   :  { %v2281_v57 = vrot.slane %v2258_v58, 3  ;;  %v2299_v37 = vrot.slane %v2258_v58, 5  ;;  %v2316_v62 = vrot.slane %v2258_v58, 7  ;;  %v2334_v17 = vrot.slane %v2258_v58, 1 }
 0x4f1   :  { %v2298_v38 = vsel %vm2279_vm3, %v2297_v32, %v2296_v5  ;;  %v2333_v28 = vsel %vm2279_vm3, %v2332_v22, %v2331_v51  ;;  %v2280_v12 = vsel %vm2279_vm3, %v2278_v44, %v2277_v39  ;;  %v2287_v24 = vrot.slane %v2260_v8, 1 }
 0x4f2   :  { %v2317_v25 = vsel %vm2282_vm4, %v2316_v62, %v2315_v21  ;;  %v2300_v11 = vsel %vm2282_vm4, %v2299_v37, %v2298_v38  ;;  %v2335_v26 = vsel %vm2282_vm4, %v2334_v17, %v2333_v28  ;;  %v2283_v27 = vsel %vm2282_vm4, %v2281_v57, %v2280_v12 }
 0x4f3   :  { %v2319_v7 = vsel %vm2285_vm5, %v2318_v61, %v2317_v25  ;;  %v2302_v2 = vsel %vm2285_vm5, %v2301_v0, %v2300_v11  ;;  %v2336_v9 = vsel %vm2285_vm5, %v2259_v18, %v2335_v26  ;;  %v2286_v29 = vsel %vm2285_vm5, %v2284_v10, %v2283_v27 }
 0x4f4   :  { %v2321_v31 = vsel %vm2288_vm6, %v2320_v59, %v2319_v7  ;;  %v2304_v13 = vsel %vm2288_vm6, %v2303_v56, %v2302_v2  ;;  %v2338_v4 = vsel %vm2288_vm6, %v2337_v23, %v2336_v9  ;;  %v2289_v33 = vsel %vm2288_vm6, %v2287_v24, %v2286_v29 }
 0x4f5   :  { %2322 = vrot.lane.b32.xlu1 %v2321_v31, %s3113_s4  ;;  %2305 = vrot.lane.b32.xlu0 %v2304_v13, %s3115_s18 }
 0x4f9   :  { %2339 = vrot.lane.b32.xlu0 %v2338_v4, %s3112_s14 }
 0x567   :  { %v2306_v30 = vpop.permute.xlu0 %2305  ;;  %v2323_v40 = vpop.permute.xlu1 %2322 }
 0x568   :  { %v2342_v35 = vsel %vm1837_vm15, %v2289_v33, %v2306_v30 }
 0x569   :  { %v2343_v36 = vsel %vm1068_vm9, %v2342_v35, %v2323_v40 }
 0x56a   :  { %v2345_v46 = vpack.c.bf16 %v2343_v36, %v2343_v36 }
 0x56b   :  { %v2340_v20 = vpop.permute.xlu0 %2339 }
 0x56c   :  { %v2344_v42 = vsel %vm1854_vm13, %v2323_v40, %v2340_v20 }
 0x56d   :  { %v2346_v43 = vpack.c.bf16 %v2344_v42, %v2344_v42 }
 0x56f   :  { %2581 = vmatprep.mubr.msk.bf16.mxu0 %vm1863_vm14, %v2346_v43 }
 0x570   :  { %2486 = vmatmul.mubr.bf16.vlgmr.msra.gmra.mrb[48].mxu0 %v2345_v46 }
 0x643   :  { %v2487_v14 = vpop.f32.mrb[48].mxu0 }
 0x644   :  { %v2488_v34 = vadd.f32 %v2568_v47, %v2487_v14  ;;  %v2489_v60 = vpop.f32.mrb[49].mxu0 }
 0x645   :  { %v2490_v49 = vpop.f32.mrb[50].mxu0 }
 0x646   :  { %2493 = vst [vmem:[%s4279_s9] sm:$0xff] %v2488_v34  ;;  %v2491_v48 = vpop.f32.mrb[51].mxu0 }

</bundles_post_ra>
